<compile_context>
chip_gen: v5e
topology: v5e:2x2
jax: 0.10.0
libtpu: 0.0.40
codegen_flags: <defaults>
</compile_context>

<pallas_src>
import functools
import math

import jax
import jax.numpy as jnp
from jax import lax
from jax.experimental import pallas as pl
from jax.experimental.pallas import tpu as pltpu


_FAST_PATH_MAX_VOCAB = 256          # static-unroll bound for the VMEM fast path
_FAST_PATH_MAX_TABLE_BYTES = 2 << 20
_WAVE = 32                          # concurrent row DMAs / DMA-semaphore ring size
_BLOCK_BUDGET_BYTES = 4 << 20       # per-step output-block bytes (double-buffered)


def _round_up(x, m):
    return ((x + m - 1) // m) * m


# -----------------------------------------------------------------------------
# Path 1: small table resident in VMEM — exact compare/select gather, no row DMAs.
# -----------------------------------------------------------------------------
def _vmem_table_kernel(vocab, ids_ref, emb_ref, out_ref):
    """ids_ref: VMEM (T, 1) int32; emb_ref: VMEM (vocab, dim); out_ref: (T, dim)."""
    ids = ids_ref[...]                                     # (T, 1)
    acc = jnp.zeros(out_ref.shape, dtype=out_ref.dtype)
    for k in range(vocab):                                 # static unroll (vocab small)
        acc = jnp.where(ids == k, emb_ref[pl.ds(k, 1), :], acc)
    out_ref[...] = acc


def _lookup_vmem_table(ids, embedding):
    vocab, dim = embedding.shape
    n = ids.shape[0]
    itemsize = jnp.dtype(embedding.dtype).itemsize

    tok = max(8, min(256, _round_up(n, 8)))
    n_pad = _round_up(n, tok)
    ids_col = jnp.pad(ids, (0, n_pad - n)).reshape(n_pad, 1)

    return pl.pallas_call(
        functools.partial(_vmem_table_kernel, vocab),
        out_shape=jax.ShapeDtypeStruct((n_pad, dim), embedding.dtype),
        grid=(n_pad // tok,),
        in_specs=[
            pl.BlockSpec((tok, 1), lambda i: (i, 0)),       # token-id block
            pl.BlockSpec((vocab, dim), lambda i: (0, 0)),   # whole table, fetched once
        ],
        out_specs=pl.BlockSpec((tok, dim), lambda i: (i, 0)),
        compiler_params=pltpu.CompilerParams(
            dimension_semantics=("parallel",)),
        cost_estimate=pl.CostEstimate(
            flops=0, transcendentals=0,
            bytes_accessed=(vocab * dim + n_pad * dim) * itemsize + 4 * n_pad),
    )(ids_col, embedding)


# -----------------------------------------------------------------------------
# Path 2: HBM-resident table — scalar-prefetched ids drive row DMAs straight
# into the pipelined output block (no staging buffer).
# -----------------------------------------------------------------------------
def _dma_gather_kernel(tokens_per_step, wave, ids_ref, emb_hbm, out_ref, sems):
    """ids_ref: SMEM (n_pad,) int32 (scalar prefetch);
    emb_hbm: HBM (vocab, W) raw ref; out_ref: VMEM (tokens_per_step, W) output
    block; sems: (wave,) DMA semaphores (fixed ring, reused every wave)."""
    base = pl.program_id(0) * tokens_per_step
    n_waves = tokens_per_step // wave

    def run_wave(w):
        off = w * wave
        copies = []
        for t in range(wave):                        # bounded unroll (<= _WAVE)
            row = ids_ref[base + off + t]
            cp = pltpu.make_async_copy(
                emb_hbm.at[pl.ds(row, 1), :],        # HBM row `row`
                out_ref.at[pl.ds(off + t, 1), :],    # straight into the output block
                sems.at[t])
            cp.start()
            copies.append(cp)
        for cp in copies:                            # reuse the same descriptors:
            cp.wait()                                # no SMEM reads after the waits

    if n_waves == 1:
        run_wave(0)
    else:
        def body(w, carry):                          # bounds code size for large T
            run_wave(w)
            return carry
        lax.fori_loop(0, n_waves, body, 0)


def _choose_tokens_per_step(n, row_bytes):
    tok = _BLOCK_BUDGET_BYTES // max(row_bytes, 1)
    tok = int(max(8, min(512, tok)))
    tok = min(tok, _round_up(n, 8))
    tok = max(8, (tok // 8) * 8)                     # sublane-aligned block
    wave = min(_WAVE, tok)
    tok = max(wave, (tok // wave) * wave)            # waves evenly divide the block
    return tok, wave


def _lookup_dma_gather(ids, embedding):
    vocab, dim = embedding.shape
    n = ids.shape[0]
    itemsize = jnp.dtype(embedding.dtype).itemsize

    # Sub-32-bit tables: pack rows into a uint32 container so every row DMA is
    # a clean word-aligned contiguous copy (no packed/partial sublane writes).
    if itemsize < 4 and (dim * itemsize) % 4 == 0:
        pack = 4 // itemsize
        table = lax.bitcast_convert_type(
            embedding.reshape(vocab, dim // pack, pack), jnp.uint32)
    else:
        pack = 1
        table = embedding
    width = table.shape[1]
    row_bytes = width * jnp.dtype(table.dtype).itemsize

    tok, wave = _choose_tokens_per_step(n, row_bytes)
    n_pad = _round_up(n, tok)
    ids_p = jnp.pad(ids, (0, n_pad - n)) if n_pad != n else ids

    out = pl.pallas_call(
        functools.partial(_dma_gather_kernel, tok, wave),
        out_shape=jax.ShapeDtypeStruct((n_pad, width), table.dtype),
        grid_spec=pltpu.PrefetchScalarGridSpec(
            num_scalar_prefetch=1,
            grid=(n_pad // tok,),
            in_specs=[pl.BlockSpec(memory_space=pl.ANY)],   # table stays in HBM
            out_specs=pl.BlockSpec((tok, width), lambda i, ids_sm: (i, 0)),
            scratch_shapes=[pltpu.SemaphoreType.DMA((wave,))]),
        compiler_params=pltpu.CompilerParams(
            dimension_semantics=("parallel",)),
        cost_estimate=pl.CostEstimate(
            flops=0, transcendentals=0,
            bytes_accessed=2 * n_pad * dim * itemsize + 4 * n_pad),
    )(ids_p, table)

    if pack > 1:
        out = lax.bitcast_convert_type(out, embedding.dtype).reshape(n_pad, dim)
    return out


# -----------------------------------------------------------------------------
# Public wrapper (== EmbeddingLayer.forward)
# -----------------------------------------------------------------------------
def embedding_lookup(x, embedding, *, force_path=None):
    """Returns embedding[x].  force_path: None (auto), "vmem", or "dma"."""
    vocab, dim = embedding.shape
    orig_shape = x.shape
    # Clamp untrusted ids so an out-of-range id can never become an OOB DMA.
    ids = jnp.clip(x.reshape(-1).astype(jnp.int32), 0, vocab - 1)
    n = ids.shape[0]
    itemsize = jnp.dtype(embedding.dtype).itemsize

    use_vmem = (vocab <= _FAST_PATH_MAX_VOCAB
                and vocab * dim * itemsize <= _FAST_PATH_MAX_TABLE_BYTES)
    if force_path == "vmem":
        use_vmem = True
    elif force_path == "dma":
        use_vmem = False

    out = (_lookup_vmem_table(ids, embedding) if use_vmem
           else _lookup_dma_gather(ids, embedding))
    return out[:n].reshape(*orig_shape, dim)


def init_embedding(key, vocab_dim, dim):
    """Deterministic init mimicking kaiming_uniform_(a=sqrt(5)) on (V, D)."""
    bound = 1.0 / math.sqrt(dim)
    return jax.random.uniform(key, (vocab_dim, dim), jnp.float32,
                              minval=-bound, maxval=bound)


if __name__ == "__main__":
    VOCAB = 64      # vocab_dim
    DIM = 128       # dim (lane-dense: multiple of 128)
    B, S = 2, 8     # batch, sequence of token ids

    key = jax.random.PRNGKey(0)
    k_emb, k_ids = jax.random.split(key)
    embedding = init_embedding(k_emb, VOCAB, DIM)
    x = jax.random.randint(k_ids, (B, S), 0, VOCAB, dtype=jnp.int32)

    ref = embedding[x]                      # pure-JAX reference of the forward

    # 1) auto dispatch -> small-table VMEM fast path (no per-row DMAs)
    out_fast = jax.block_until_ready(embedding_lookup(x, embedding))
    assert out_fast.shape == (B, S, DIM)
    assert jnp.array_equal(out_fast, ref)

    # 2) large-table path forced: HBM table, row DMAs straight into out_ref
    out_dma = jax.block_until_ready(embedding_lookup(x, embedding,
                                                     force_path="dma"))
    assert jnp.array_equal(out_dma, ref)

    # 3) sub-32-bit table (bf16): rows packed into uint32 for word-aligned DMAs
    emb_bf16 = embedding.astype(jnp.bfloat16)
    out_bf16 = jax.block_until_ready(embedding_lookup(x, emb_bf16,
                                                      force_path="dma"))
    assert jnp.array_equal(out_bf16, emb_bf16[x])

    print("KERNEL_OK")
</pallas_src>

<mosaic_0001>
module attributes {stable_mosaic.version = 11 : i64} {
  func.func @_vmem_table_kernel(%arg0: i32, %arg1: memref<16x1xi32, #tpu.memory_space<vmem>>, %arg2: memref<64x128xf32, #tpu.memory_space<vmem>>, %arg3: memref<16x128xf32, #tpu.memory_space<vmem>>) attributes {dimension_semantics = [#tpu.dimension_semantics<parallel>], iteration_bounds = array<i64: 1>, scalar_prefetch = 0 : i64, scratch_operands = 0 : i64, tpu.core_type = #tpu.core_type<tc>, window_params = [{transform_indices = @transform_0, window_bounds = array<i64: 16, 1>}, {pipeline_mode = #tpu.pipeline_mode<synchronous>, transform_indices = @transform_1, window_bounds = array<i64: 64, 128>}, {transform_indices = @transform_2, window_bounds = array<i64: 16, 128>}]} {
    %c0 = arith.constant 0 : index
    %c0_0 = arith.constant 0 : index
    %0 = vector.load %arg1[%c0, %c0_0] : memref<16x1xi32, #tpu.memory_space<vmem>>, vector<16x1xi32>
    %cst = arith.constant 0.000000e+00 : f32
    %1 = vector.broadcast %cst : f32 to vector<16x128xf32>
    %c0_i32 = arith.constant 0 : i32
    %2 = vector.broadcast %c0_i32 : i32 to vector<16x1xi32>
    %3 = arith.cmpi eq, %0, %2 : vector<16x1xi32>
    %c0_1 = arith.constant 0 : index
    %c0_2 = arith.constant 0 : index
    %4 = vector.load %arg2[%c0_1, %c0_2] : memref<64x128xf32, #tpu.memory_space<vmem>>, vector<1x128xf32>
    %5 = vector.shape_cast %3 : vector<16x1xi1> to vector<16x1xi1>
    %6 = vector.broadcast %5 : vector<16x1xi1> to vector<16x128xi1>
    %7 = vector.shape_cast %4 : vector<1x128xf32> to vector<1x128xf32>
    %8 = vector.broadcast %7 : vector<1x128xf32> to vector<16x128xf32>
    %9 = arith.select %6, %8, %1 : vector<16x128xi1>, vector<16x128xf32>
    %c1_i32 = arith.constant 1 : i32
    %10 = vector.broadcast %c1_i32 : i32 to vector<16x1xi32>
    %11 = arith.cmpi eq, %0, %10 : vector<16x1xi32>
    %c1 = arith.constant 1 : index
    %c0_3 = arith.constant 0 : index
    %12 = vector.load %arg2[%c1, %c0_3] : memref<64x128xf32, #tpu.memory_space<vmem>>, vector<1x128xf32>
    %13 = vector.shape_cast %11 : vector<16x1xi1> to vector<16x1xi1>
    %14 = vector.broadcast %13 : vector<16x1xi1> to vector<16x128xi1>
    %15 = vector.shape_cast %12 : vector<1x128xf32> to vector<1x128xf32>
    %16 = vector.broadcast %15 : vector<1x128xf32> to vector<16x128xf32>
    %17 = arith.select %14, %16, %9 : vector<16x128xi1>, vector<16x128xf32>
    %c2_i32 = arith.constant 2 : i32
    %18 = vector.broadcast %c2_i32 : i32 to vector<16x1xi32>
    %19 = arith.cmpi eq, %0, %18 : vector<16x1xi32>
    %c2 = arith.constant 2 : index
    %c0_4 = arith.constant 0 : index
    %20 = vector.load %arg2[%c2, %c0_4] : memref<64x128xf32, #tpu.memory_space<vmem>>, vector<1x128xf32>
    %21 = vector.shape_cast %19 : vector<16x1xi1> to vector<16x1xi1>
    %22 = vector.broadcast %21 : vector<16x1xi1> to vector<16x128xi1>
    %23 = vector.shape_cast %20 : vector<1x128xf32> to vector<1x128xf32>
    %24 = vector.broadcast %23 : vector<1x128xf32> to vector<16x128xf32>
    %25 = arith.select %22, %24, %17 : vector<16x128xi1>, vector<16x128xf32>
    %c3_i32 = arith.constant 3 : i32
    %26 = vector.broadcast %c3_i32 : i32 to vector<16x1xi32>
    %27 = arith.cmpi eq, %0, %26 : vector<16x1xi32>
    %c3 = arith.constant 3 : index
    %c0_5 = arith.constant 0 : index
    %28 = vector.load %arg2[%c3, %c0_5] : memref<64x128xf32, #tpu.memory_space<vmem>>, vector<1x128xf32>
    %29 = vector.shape_cast %27 : vector<16x1xi1> to vector<16x1xi1>
    %30 = vector.broadcast %29 : vector<16x1xi1> to vector<16x128xi1>
    %31 = vector.shape_cast %28 : vector<1x128xf32> to vector<1x128xf32>
    %32 = vector.broadcast %31 : vector<1x128xf32> to vector<16x128xf32>
    %33 = arith.select %30, %32, %25 : vector<16x128xi1>, vector<16x128xf32>
    %c4_i32 = arith.constant 4 : i32
    %34 = vector.broadcast %c4_i32 : i32 to vector<16x1xi32>
    %35 = arith.cmpi eq, %0, %34 : vector<16x1xi32>
    %c4 = arith.constant 4 : index
    %c0_6 = arith.constant 0 : index
    %36 = vector.load %arg2[%c4, %c0_6] : memref<64x128xf32, #tpu.memory_space<vmem>>, vector<1x128xf32>
    %37 = vector.shape_cast %35 : vector<16x1xi1> to vector<16x1xi1>
    %38 = vector.broadcast %37 : vector<16x1xi1> to vector<16x128xi1>
    %39 = vector.shape_cast %36 : vector<1x128xf32> to vector<1x128xf32>
    %40 = vector.broadcast %39 : vector<1x128xf32> to vector<16x128xf32>
    %41 = arith.select %38, %40, %33 : vector<16x128xi1>, vector<16x128xf32>
    %c5_i32 = arith.constant 5 : i32
    %42 = vector.broadcast %c5_i32 : i32 to vector<16x1xi32>
    %43 = arith.cmpi eq, %0, %42 : vector<16x1xi32>
    %c5 = arith.constant 5 : index
    %c0_7 = arith.constant 0 : index
    %44 = vector.load %arg2[%c5, %c0_7] : memref<64x128xf32, #tpu.memory_space<vmem>>, vector<1x128xf32>
    %45 = vector.shape_cast %43 : vector<16x1xi1> to vector<16x1xi1>
    %46 = vector.broadcast %45 : vector<16x1xi1> to vector<16x128xi1>
    %47 = vector.shape_cast %44 : vector<1x128xf32> to vector<1x128xf32>
    %48 = vector.broadcast %47 : vector<1x128xf32> to vector<16x128xf32>
    %49 = arith.select %46, %48, %41 : vector<16x128xi1>, vector<16x128xf32>
    %c6_i32 = arith.constant 6 : i32
    %50 = vector.broadcast %c6_i32 : i32 to vector<16x1xi32>
    %51 = arith.cmpi eq, %0, %50 : vector<16x1xi32>
    %c6 = arith.constant 6 : index
    %c0_8 = arith.constant 0 : index
    %52 = vector.load %arg2[%c6, %c0_8] : memref<64x128xf32, #tpu.memory_space<vmem>>, vector<1x128xf32>
    %53 = vector.shape_cast %51 : vector<16x1xi1> to vector<16x1xi1>
    %54 = vector.broadcast %53 : vector<16x1xi1> to vector<16x128xi1>
    %55 = vector.shape_cast %52 : vector<1x128xf32> to vector<1x128xf32>
    %56 = vector.broadcast %55 : vector<1x128xf32> to vector<16x128xf32>
    %57 = arith.select %54, %56, %49 : vector<16x128xi1>, vector<16x128xf32>
    %c7_i32 = arith.constant 7 : i32
    %58 = vector.broadcast %c7_i32 : i32 to vector<16x1xi32>
    %59 = arith.cmpi eq, %0, %58 : vector<16x1xi32>
    %c7 = arith.constant 7 : index
    %c0_9 = arith.constant 0 : index
    %60 = vector.load %arg2[%c7, %c0_9] : memref<64x128xf32, #tpu.memory_space<vmem>>, vector<1x128xf32>
    %61 = vector.shape_cast %59 : vector<16x1xi1> to vector<16x1xi1>
    %62 = vector.broadcast %61 : vector<16x1xi1> to vector<16x128xi1>
    %63 = vector.shape_cast %60 : vector<1x128xf32> to vector<1x128xf32>
    %64 = vector.broadcast %63 : vector<1x128xf32> to vector<16x128xf32>
    %65 = arith.select %62, %64, %57 : vector<16x128xi1>, vector<16x128xf32>
    %c8_i32 = arith.constant 8 : i32
    %66 = vector.broadcast %c8_i32 : i32 to vector<16x1xi32>
    %67 = arith.cmpi eq, %0, %66 : vector<16x1xi32>
    %c8 = arith.constant 8 : index
    %c0_10 = arith.constant 0 : index
    %68 = vector.load %arg2[%c8, %c0_10] : memref<64x128xf32, #tpu.memory_space<vmem>>, vector<1x128xf32>
    %69 = vector.shape_cast %67 : vector<16x1xi1> to vector<16x1xi1>
    %70 = vector.broadcast %69 : vector<16x1xi1> to vector<16x128xi1>
    %71 = vector.shape_cast %68 : vector<1x128xf32> to vector<1x128xf32>
    %72 = vector.broadcast %71 : vector<1x128xf32> to vector<16x128xf32>
    %73 = arith.select %70, %72, %65 : vector<16x128xi1>, vector<16x128xf32>
    %c9_i32 = arith.constant 9 : i32
    %74 = vector.broadcast %c9_i32 : i32 to vector<16x1xi32>
    %75 = arith.cmpi eq, %0, %74 : vector<16x1xi32>
    %c9 = arith.constant 9 : index
    %c0_11 = arith.constant 0 : index
    %76 = vector.load %arg2[%c9, %c0_11] : memref<64x128xf32, #tpu.memory_space<vmem>>, vector<1x128xf32>
    %77 = vector.shape_cast %75 : vector<16x1xi1> to vector<16x1xi1>
    %78 = vector.broadcast %77 : vector<16x1xi1> to vector<16x128xi1>
    %79 = vector.shape_cast %76 : vector<1x128xf32> to vector<1x128xf32>
    %80 = vector.broadcast %79 : vector<1x128xf32> to vector<16x128xf32>
    %81 = arith.select %78, %80, %73 : vector<16x128xi1>, vector<16x128xf32>
    %c10_i32 = arith.constant 10 : i32
    %82 = vector.broadcast %c10_i32 : i32 to vector<16x1xi32>
    %83 = arith.cmpi eq, %0, %82 : vector<16x1xi32>
    %c10 = arith.constant 10 : index
    %c0_12 = arith.constant 0 : index
    %84 = vector.load %arg2[%c10, %c0_12] : memref<64x128xf32, #tpu.memory_space<vmem>>, vector<1x128xf32>
    %85 = vector.shape_cast %83 : vector<16x1xi1> to vector<16x1xi1>
    %86 = vector.broadcast %85 : vector<16x1xi1> to vector<16x128xi1>
    %87 = vector.shape_cast %84 : vector<1x128xf32> to vector<1x128xf32>
    %88 = vector.broadcast %87 : vector<1x128xf32> to vector<16x128xf32>
    %89 = arith.select %86, %88, %81 : vector<16x128xi1>, vector<16x128xf32>
    %c11_i32 = arith.constant 11 : i32
    %90 = vector.broadcast %c11_i32 : i32 to vector<16x1xi32>
    %91 = arith.cmpi eq, %0, %90 : vector<16x1xi32>
    %c11 = arith.constant 11 : index
    %c0_13 = arith.constant 0 : index
    %92 = vector.load %arg2[%c11, %c0_13] : memref<64x128xf32, #tpu.memory_space<vmem>>, vector<1x128xf32>
    %93 = vector.shape_cast %91 : vector<16x1xi1> to vector<16x1xi1>
    %94 = vector.broadcast %93 : vector<16x1xi1> to vector<16x128xi1>
    %95 = vector.shape_cast %92 : vector<1x128xf32> to vector<1x128xf32>
    %96 = vector.broadcast %95 : vector<1x128xf32> to vector<16x128xf32>
    %97 = arith.select %94, %96, %89 : vector<16x128xi1>, vector<16x128xf32>
    %c12_i32 = arith.constant 12 : i32
    %98 = vector.broadcast %c12_i32 : i32 to vector<16x1xi32>
    %99 = arith.cmpi eq, %0, %98 : vector<16x1xi32>
    %c12 = arith.constant 12 : index
    %c0_14 = arith.constant 0 : index
    %100 = vector.load %arg2[%c12, %c0_14] : memref<64x128xf32, #tpu.memory_space<vmem>>, vector<1x128xf32>
    %101 = vector.shape_cast %99 : vector<16x1xi1> to vector<16x1xi1>
    %102 = vector.broadcast %101 : vector<16x1xi1> to vector<16x128xi1>
    %103 = vector.shape_cast %100 : vector<1x128xf32> to vector<1x128xf32>
    %104 = vector.broadcast %103 : vector<1x128xf32> to vector<16x128xf32>
    %105 = arith.select %102, %104, %97 : vector<16x128xi1>, vector<16x128xf32>
    %c13_i32 = arith.constant 13 : i32
    %106 = vector.broadcast %c13_i32 : i32 to vector<16x1xi32>
    %107 = arith.cmpi eq, %0, %106 : vector<16x1xi32>
    %c13 = arith.constant 13 : index
    %c0_15 = arith.constant 0 : index
    %108 = vector.load %arg2[%c13, %c0_15] : memref<64x128xf32, #tpu.memory_space<vmem>>, vector<1x128xf32>
    %109 = vector.shape_cast %107 : vector<16x1xi1> to vector<16x1xi1>
    %110 = vector.broadcast %109 : vector<16x1xi1> to vector<16x128xi1>
    %111 = vector.shape_cast %108 : vector<1x128xf32> to vector<1x128xf32>
    %112 = vector.broadcast %111 : vector<1x128xf32> to vector<16x128xf32>
    %113 = arith.select %110, %112, %105 : vector<16x128xi1>, vector<16x128xf32>
    %c14_i32 = arith.constant 14 : i32
    %114 = vector.broadcast %c14_i32 : i32 to vector<16x1xi32>
    %115 = arith.cmpi eq, %0, %114 : vector<16x1xi32>
    %c14 = arith.constant 14 : index
    %c0_16 = arith.constant 0 : index
    %116 = vector.load %arg2[%c14, %c0_16] : memref<64x128xf32, #tpu.memory_space<vmem>>, vector<1x128xf32>
    %117 = vector.shape_cast %115 : vector<16x1xi1> to vector<16x1xi1>
    %118 = vector.broadcast %117 : vector<16x1xi1> to vector<16x128xi1>
    %119 = vector.shape_cast %116 : vector<1x128xf32> to vector<1x128xf32>
    %120 = vector.broadcast %119 : vector<1x128xf32> to vector<16x128xf32>
    %121 = arith.select %118, %120, %113 : vector<16x128xi1>, vector<16x128xf32>
    %c15_i32 = arith.constant 15 : i32
    %122 = vector.broadcast %c15_i32 : i32 to vector<16x1xi32>
    %123 = arith.cmpi eq, %0, %122 : vector<16x1xi32>
    %c15 = arith.constant 15 : index
    %c0_17 = arith.constant 0 : index
    %124 = vector.load %arg2[%c15, %c0_17] : memref<64x128xf32, #tpu.memory_space<vmem>>, vector<1x128xf32>
    %125 = vector.shape_cast %123 : vector<16x1xi1> to vector<16x1xi1>
    %126 = vector.broadcast %125 : vector<16x1xi1> to vector<16x128xi1>
    %127 = vector.shape_cast %124 : vector<1x128xf32> to vector<1x128xf32>
    %128 = vector.broadcast %127 : vector<1x128xf32> to vector<16x128xf32>
    %129 = arith.select %126, %128, %121 : vector<16x128xi1>, vector<16x128xf32>
    %c16_i32 = arith.constant 16 : i32
    %130 = vector.broadcast %c16_i32 : i32 to vector<16x1xi32>
    %131 = arith.cmpi eq, %0, %130 : vector<16x1xi32>
    %c16 = arith.constant 16 : index
    %c0_18 = arith.constant 0 : index
    %132 = vector.load %arg2[%c16, %c0_18] : memref<64x128xf32, #tpu.memory_space<vmem>>, vector<1x128xf32>
    %133 = vector.shape_cast %131 : vector<16x1xi1> to vector<16x1xi1>
    %134 = vector.broadcast %133 : vector<16x1xi1> to vector<16x128xi1>
    %135 = vector.shape_cast %132 : vector<1x128xf32> to vector<1x128xf32>
    %136 = vector.broadcast %135 : vector<1x128xf32> to vector<16x128xf32>
    %137 = arith.select %134, %136, %129 : vector<16x128xi1>, vector<16x128xf32>
    %c17_i32 = arith.constant 17 : i32
    %138 = vector.broadcast %c17_i32 : i32 to vector<16x1xi32>
    %139 = arith.cmpi eq, %0, %138 : vector<16x1xi32>
    %c17 = arith.constant 17 : index
    %c0_19 = arith.constant 0 : index
    %140 = vector.load %arg2[%c17, %c0_19] : memref<64x128xf32, #tpu.memory_space<vmem>>, vector<1x128xf32>
    %141 = vector.shape_cast %139 : vector<16x1xi1> to vector<16x1xi1>
    %142 = vector.broadcast %141 : vector<16x1xi1> to vector<16x128xi1>
    %143 = vector.shape_cast %140 : vector<1x128xf32> to vector<1x128xf32>
    %144 = vector.broadcast %143 : vector<1x128xf32> to vector<16x128xf32>
    %145 = arith.select %142, %144, %137 : vector<16x128xi1>, vector<16x128xf32>
    %c18_i32 = arith.constant 18 : i32
    %146 = vector.broadcast %c18_i32 : i32 to vector<16x1xi32>
    %147 = arith.cmpi eq, %0, %146 : vector<16x1xi32>
    %c18 = arith.constant 18 : index
    %c0_20 = arith.constant 0 : index
    %148 = vector.load %arg2[%c18, %c0_20] : memref<64x128xf32, #tpu.memory_space<vmem>>, vector<1x128xf32>
    %149 = vector.shape_cast %147 : vector<16x1xi1> to vector<16x1xi1>
    %150 = vector.broadcast %149 : vector<16x1xi1> to vector<16x128xi1>
    %151 = vector.shape_cast %148 : vector<1x128xf32> to vector<1x128xf32>
    %152 = vector.broadcast %151 : vector<1x128xf32> to vector<16x128xf32>
    %153 = arith.select %150, %152, %145 : vector<16x128xi1>, vector<16x128xf32>
    %c19_i32 = arith.constant 19 : i32
    %154 = vector.broadcast %c19_i32 : i32 to vector<16x1xi32>
    %155 = arith.cmpi eq, %0, %154 : vector<16x1xi32>
    %c19 = arith.constant 19 : index
    %c0_21 = arith.constant 0 : index
    %156 = vector.load %arg2[%c19, %c0_21] : memref<64x128xf32, #tpu.memory_space<vmem>>, vector<1x128xf32>
    %157 = vector.shape_cast %155 : vector<16x1xi1> to vector<16x1xi1>
    %158 = vector.broadcast %157 : vector<16x1xi1> to vector<16x128xi1>
    %159 = vector.shape_cast %156 : vector<1x128xf32> to vector<1x128xf32>
    %160 = vector.broadcast %159 : vector<1x128xf32> to vector<16x128xf32>
    %161 = arith.select %158, %160, %153 : vector<16x128xi1>, vector<16x128xf32>
    %c20_i32 = arith.constant 20 : i32
    %162 = vector.broadcast %c20_i32 : i32 to vector<16x1xi32>
    %163 = arith.cmpi eq, %0, %162 : vector<16x1xi32>
    %c20 = arith.constant 20 : index
    %c0_22 = arith.constant 0 : index
    %164 = vector.load %arg2[%c20, %c0_22] : memref<64x128xf32, #tpu.memory_space<vmem>>, vector<1x128xf32>
    %165 = vector.shape_cast %163 : vector<16x1xi1> to vector<16x1xi1>
    %166 = vector.broadcast %165 : vector<16x1xi1> to vector<16x128xi1>
    %167 = vector.shape_cast %164 : vector<1x128xf32> to vector<1x128xf32>
    %168 = vector.broadcast %167 : vector<1x128xf32> to vector<16x128xf32>
    %169 = arith.select %166, %168, %161 : vector<16x128xi1>, vector<16x128xf32>
    %c21_i32 = arith.constant 21 : i32
    %170 = vector.broadcast %c21_i32 : i32 to vector<16x1xi32>
    %171 = arith.cmpi eq, %0, %170 : vector<16x1xi32>
    %c21 = arith.constant 21 : index
    %c0_23 = arith.constant 0 : index
    %172 = vector.load %arg2[%c21, %c0_23] : memref<64x128xf32, #tpu.memory_space<vmem>>, vector<1x128xf32>
    %173 = vector.shape_cast %171 : vector<16x1xi1> to vector<16x1xi1>
    %174 = vector.broadcast %173 : vector<16x1xi1> to vector<16x128xi1>
    %175 = vector.shape_cast %172 : vector<1x128xf32> to vector<1x128xf32>
    %176 = vector.broadcast %175 : vector<1x128xf32> to vector<16x128xf32>
    %177 = arith.select %174, %176, %169 : vector<16x128xi1>, vector<16x128xf32>
    %c22_i32 = arith.constant 22 : i32
    %178 = vector.broadcast %c22_i32 : i32 to vector<16x1xi32>
    %179 = arith.cmpi eq, %0, %178 : vector<16x1xi32>
    %c22 = arith.constant 22 : index
    %c0_24 = arith.constant 0 : index
    %180 = vector.load %arg2[%c22, %c0_24] : memref<64x128xf32, #tpu.memory_space<vmem>>, vector<1x128xf32>
    %181 = vector.shape_cast %179 : vector<16x1xi1> to vector<16x1xi1>
    %182 = vector.broadcast %181 : vector<16x1xi1> to vector<16x128xi1>
    %183 = vector.shape_cast %180 : vector<1x128xf32> to vector<1x128xf32>
    %184 = vector.broadcast %183 : vector<1x128xf32> to vector<16x128xf32>
    %185 = arith.select %182, %184, %177 : vector<16x128xi1>, vector<16x128xf32>
    %c23_i32 = arith.constant 23 : i32
    %186 = vector.broadcast %c23_i32 : i32 to vector<16x1xi32>
    %187 = arith.cmpi eq, %0, %186 : vector<16x1xi32>
    %c23 = arith.constant 23 : index
    %c0_25 = arith.constant 0 : index
    %188 = vector.load %arg2[%c23, %c0_25] : memref<64x128xf32, #tpu.memory_space<vmem>>, vector<1x128xf32>
    %189 = vector.shape_cast %187 : vector<16x1xi1> to vector<16x1xi1>
    %190 = vector.broadcast %189 : vector<16x1xi1> to vector<16x128xi1>
    %191 = vector.shape_cast %188 : vector<1x128xf32> to vector<1x128xf32>
    %192 = vector.broadcast %191 : vector<1x128xf32> to vector<16x128xf32>
    %193 = arith.select %190, %192, %185 : vector<16x128xi1>, vector<16x128xf32>
    %c24_i32 = arith.constant 24 : i32
    %194 = vector.broadcast %c24_i32 : i32 to vector<16x1xi32>
    %195 = arith.cmpi eq, %0, %194 : vector<16x1xi32>
    %c24 = arith.constant 24 : index
    %c0_26 = arith.constant 0 : index
    %196 = vector.load %arg2[%c24, %c0_26] : memref<64x128xf32, #tpu.memory_space<vmem>>, vector<1x128xf32>
    %197 = vector.shape_cast %195 : vector<16x1xi1> to vector<16x1xi1>
    %198 = vector.broadcast %197 : vector<16x1xi1> to vector<16x128xi1>
    %199 = vector.shape_cast %196 : vector<1x128xf32> to vector<1x128xf32>
    %200 = vector.broadcast %199 : vector<1x128xf32> to vector<16x128xf32>
    %201 = arith.select %198, %200, %193 : vector<16x128xi1>, vector<16x128xf32>
    %c25_i32 = arith.constant 25 : i32
    %202 = vector.broadcast %c25_i32 : i32 to vector<16x1xi32>
    %203 = arith.cmpi eq, %0, %202 : vector<16x1xi32>
    %c25 = arith.constant 25 : index
    %c0_27 = arith.constant 0 : index
    %204 = vector.load %arg2[%c25, %c0_27] : memref<64x128xf32, #tpu.memory_space<vmem>>, vector<1x128xf32>
    %205 = vector.shape_cast %203 : vector<16x1xi1> to vector<16x1xi1>
    %206 = vector.broadcast %205 : vector<16x1xi1> to vector<16x128xi1>
    %207 = vector.shape_cast %204 : vector<1x128xf32> to vector<1x128xf32>
    %208 = vector.broadcast %207 : vector<1x128xf32> to vector<16x128xf32>
    %209 = arith.select %206, %208, %201 : vector<16x128xi1>, vector<16x128xf32>
    %c26_i32 = arith.constant 26 : i32
    %210 = vector.broadcast %c26_i32 : i32 to vector<16x1xi32>
    %211 = arith.cmpi eq, %0, %210 : vector<16x1xi32>
    %c26 = arith.constant 26 : index
    %c0_28 = arith.constant 0 : index
    %212 = vector.load %arg2[%c26, %c0_28] : memref<64x128xf32, #tpu.memory_space<vmem>>, vector<1x128xf32>
    %213 = vector.shape_cast %211 : vector<16x1xi1> to vector<16x1xi1>
    %214 = vector.broadcast %213 : vector<16x1xi1> to vector<16x128xi1>
    %215 = vector.shape_cast %212 : vector<1x128xf32> to vector<1x128xf32>
    %216 = vector.broadcast %215 : vector<1x128xf32> to vector<16x128xf32>
    %217 = arith.select %214, %216, %209 : vector<16x128xi1>, vector<16x128xf32>
    %c27_i32 = arith.constant 27 : i32
    %218 = vector.broadcast %c27_i32 : i32 to vector<16x1xi32>
    %219 = arith.cmpi eq, %0, %218 : vector<16x1xi32>
    %c27 = arith.constant 27 : index
    %c0_29 = arith.constant 0 : index
    %220 = vector.load %arg2[%c27, %c0_29] : memref<64x128xf32, #tpu.memory_space<vmem>>, vector<1x128xf32>
    %221 = vector.shape_cast %219 : vector<16x1xi1> to vector<16x1xi1>
    %222 = vector.broadcast %221 : vector<16x1xi1> to vector<16x128xi1>
    %223 = vector.shape_cast %220 : vector<1x128xf32> to vector<1x128xf32>
    %224 = vector.broadcast %223 : vector<1x128xf32> to vector<16x128xf32>
    %225 = arith.select %222, %224, %217 : vector<16x128xi1>, vector<16x128xf32>
    %c28_i32 = arith.constant 28 : i32
    %226 = vector.broadcast %c28_i32 : i32 to vector<16x1xi32>
    %227 = arith.cmpi eq, %0, %226 : vector<16x1xi32>
    %c28 = arith.constant 28 : index
    %c0_30 = arith.constant 0 : index
    %228 = vector.load %arg2[%c28, %c0_30] : memref<64x128xf32, #tpu.memory_space<vmem>>, vector<1x128xf32>
    %229 = vector.shape_cast %227 : vector<16x1xi1> to vector<16x1xi1>
    %230 = vector.broadcast %229 : vector<16x1xi1> to vector<16x128xi1>
    %231 = vector.shape_cast %228 : vector<1x128xf32> to vector<1x128xf32>
    %232 = vector.broadcast %231 : vector<1x128xf32> to vector<16x128xf32>
    %233 = arith.select %230, %232, %225 : vector<16x128xi1>, vector<16x128xf32>
    %c29_i32 = arith.constant 29 : i32
    %234 = vector.broadcast %c29_i32 : i32 to vector<16x1xi32>
    %235 = arith.cmpi eq, %0, %234 : vector<16x1xi32>
    %c29 = arith.constant 29 : index
    %c0_31 = arith.constant 0 : index
    %236 = vector.load %arg2[%c29, %c0_31] : memref<64x128xf32, #tpu.memory_space<vmem>>, vector<1x128xf32>
    %237 = vector.shape_cast %235 : vector<16x1xi1> to vector<16x1xi1>
    %238 = vector.broadcast %237 : vector<16x1xi1> to vector<16x128xi1>
    %239 = vector.shape_cast %236 : vector<1x128xf32> to vector<1x128xf32>
    %240 = vector.broadcast %239 : vector<1x128xf32> to vector<16x128xf32>
    %241 = arith.select %238, %240, %233 : vector<16x128xi1>, vector<16x128xf32>
    %c30_i32 = arith.constant 30 : i32
    %242 = vector.broadcast %c30_i32 : i32 to vector<16x1xi32>
    %243 = arith.cmpi eq, %0, %242 : vector<16x1xi32>
    %c30 = arith.constant 30 : index
    %c0_32 = arith.constant 0 : index
    %244 = vector.load %arg2[%c30, %c0_32] : memref<64x128xf32, #tpu.memory_space<vmem>>, vector<1x128xf32>
    %245 = vector.shape_cast %243 : vector<16x1xi1> to vector<16x1xi1>
    %246 = vector.broadcast %245 : vector<16x1xi1> to vector<16x128xi1>
    %247 = vector.shape_cast %244 : vector<1x128xf32> to vector<1x128xf32>
    %248 = vector.broadcast %247 : vector<1x128xf32> to vector<16x128xf32>
    %249 = arith.select %246, %248, %241 : vector<16x128xi1>, vector<16x128xf32>
    %c31_i32 = arith.constant 31 : i32
    %250 = vector.broadcast %c31_i32 : i32 to vector<16x1xi32>
    %251 = arith.cmpi eq, %0, %250 : vector<16x1xi32>
    %c31 = arith.constant 31 : index
    %c0_33 = arith.constant 0 : index
    %252 = vector.load %arg2[%c31, %c0_33] : memref<64x128xf32, #tpu.memory_space<vmem>>, vector<1x128xf32>
    %253 = vector.shape_cast %251 : vector<16x1xi1> to vector<16x1xi1>
    %254 = vector.broadcast %253 : vector<16x1xi1> to vector<16x128xi1>
    %255 = vector.shape_cast %252 : vector<1x128xf32> to vector<1x128xf32>
    %256 = vector.broadcast %255 : vector<1x128xf32> to vector<16x128xf32>
    %257 = arith.select %254, %256, %249 : vector<16x128xi1>, vector<16x128xf32>
    %c32_i32 = arith.constant 32 : i32
    %258 = vector.broadcast %c32_i32 : i32 to vector<16x1xi32>
    %259 = arith.cmpi eq, %0, %258 : vector<16x1xi32>
    %c32 = arith.constant 32 : index
    %c0_34 = arith.constant 0 : index
    %260 = vector.load %arg2[%c32, %c0_34] : memref<64x128xf32, #tpu.memory_space<vmem>>, vector<1x128xf32>
    %261 = vector.shape_cast %259 : vector<16x1xi1> to vector<16x1xi1>
    %262 = vector.broadcast %261 : vector<16x1xi1> to vector<16x128xi1>
    %263 = vector.shape_cast %260 : vector<1x128xf32> to vector<1x128xf32>
    %264 = vector.broadcast %263 : vector<1x128xf32> to vector<16x128xf32>
    %265 = arith.select %262, %264, %257 : vector<16x128xi1>, vector<16x128xf32>
    %c33_i32 = arith.constant 33 : i32
    %266 = vector.broadcast %c33_i32 : i32 to vector<16x1xi32>
    %267 = arith.cmpi eq, %0, %266 : vector<16x1xi32>
    %c33 = arith.constant 33 : index
    %c0_35 = arith.constant 0 : index
    %268 = vector.load %arg2[%c33, %c0_35] : memref<64x128xf32, #tpu.memory_space<vmem>>, vector<1x128xf32>
    %269 = vector.shape_cast %267 : vector<16x1xi1> to vector<16x1xi1>
    %270 = vector.broadcast %269 : vector<16x1xi1> to vector<16x128xi1>
    %271 = vector.shape_cast %268 : vector<1x128xf32> to vector<1x128xf32>
    %272 = vector.broadcast %271 : vector<1x128xf32> to vector<16x128xf32>
    %273 = arith.select %270, %272, %265 : vector<16x128xi1>, vector<16x128xf32>
    %c34_i32 = arith.constant 34 : i32
    %274 = vector.broadcast %c34_i32 : i32 to vector<16x1xi32>
    %275 = arith.cmpi eq, %0, %274 : vector<16x1xi32>
    %c34 = arith.constant 34 : index
    %c0_36 = arith.constant 0 : index
    %276 = vector.load %arg2[%c34, %c0_36] : memref<64x128xf32, #tpu.memory_space<vmem>>, vector<1x128xf32>
    %277 = vector.shape_cast %275 : vector<16x1xi1> to vector<16x1xi1>
    %278 = vector.broadcast %277 : vector<16x1xi1> to vector<16x128xi1>
    %279 = vector.shape_cast %276 : vector<1x128xf32> to vector<1x128xf32>
    %280 = vector.broadcast %279 : vector<1x128xf32> to vector<16x128xf32>
    %281 = arith.select %278, %280, %273 : vector<16x128xi1>, vector<16x128xf32>
    %c35_i32 = arith.constant 35 : i32
    %282 = vector.broadcast %c35_i32 : i32 to vector<16x1xi32>
    %283 = arith.cmpi eq, %0, %282 : vector<16x1xi32>
    %c35 = arith.constant 35 : index
    %c0_37 = arith.constant 0 : index
    %284 = vector.load %arg2[%c35, %c0_37] : memref<64x128xf32, #tpu.memory_space<vmem>>, vector<1x128xf32>
    %285 = vector.shape_cast %283 : vector<16x1xi1> to vector<16x1xi1>
    %286 = vector.broadcast %285 : vector<16x1xi1> to vector<16x128xi1>
    %287 = vector.shape_cast %284 : vector<1x128xf32> to vector<1x128xf32>
    %288 = vector.broadcast %287 : vector<1x128xf32> to vector<16x128xf32>
    %289 = arith.select %286, %288, %281 : vector<16x128xi1>, vector<16x128xf32>
    %c36_i32 = arith.constant 36 : i32
    %290 = vector.broadcast %c36_i32 : i32 to vector<16x1xi32>
    %291 = arith.cmpi eq, %0, %290 : vector<16x1xi32>
    %c36 = arith.constant 36 : index
    %c0_38 = arith.constant 0 : index
    %292 = vector.load %arg2[%c36, %c0_38] : memref<64x128xf32, #tpu.memory_space<vmem>>, vector<1x128xf32>
    %293 = vector.shape_cast %291 : vector<16x1xi1> to vector<16x1xi1>
    %294 = vector.broadcast %293 : vector<16x1xi1> to vector<16x128xi1>
    %295 = vector.shape_cast %292 : vector<1x128xf32> to vector<1x128xf32>
    %296 = vector.broadcast %295 : vector<1x128xf32> to vector<16x128xf32>
    %297 = arith.select %294, %296, %289 : vector<16x128xi1>, vector<16x128xf32>
    %c37_i32 = arith.constant 37 : i32
    %298 = vector.broadcast %c37_i32 : i32 to vector<16x1xi32>
    %299 = arith.cmpi eq, %0, %298 : vector<16x1xi32>
    %c37 = arith.constant 37 : index
    %c0_39 = arith.constant 0 : index
    %300 = vector.load %arg2[%c37, %c0_39] : memref<64x128xf32, #tpu.memory_space<vmem>>, vector<1x128xf32>
    %301 = vector.shape_cast %299 : vector<16x1xi1> to vector<16x1xi1>
    %302 = vector.broadcast %301 : vector<16x1xi1> to vector<16x128xi1>
    %303 = vector.shape_cast %300 : vector<1x128xf32> to vector<1x128xf32>
    %304 = vector.broadcast %303 : vector<1x128xf32> to vector<16x128xf32>
    %305 = arith.select %302, %304, %297 : vector<16x128xi1>, vector<16x128xf32>
    %c38_i32 = arith.constant 38 : i32
    %306 = vector.broadcast %c38_i32 : i32 to vector<16x1xi32>
    %307 = arith.cmpi eq, %0, %306 : vector<16x1xi32>
    %c38 = arith.constant 38 : index
    %c0_40 = arith.constant 0 : index
    %308 = vector.load %arg2[%c38, %c0_40] : memref<64x128xf32, #tpu.memory_space<vmem>>, vector<1x128xf32>
    %309 = vector.shape_cast %307 : vector<16x1xi1> to vector<16x1xi1>
    %310 = vector.broadcast %309 : vector<16x1xi1> to vector<16x128xi1>
    %311 = vector.shape_cast %308 : vector<1x128xf32> to vector<1x128xf32>
    %312 = vector.broadcast %311 : vector<1x128xf32> to vector<16x128xf32>
    %313 = arith.select %310, %312, %305 : vector<16x128xi1>, vector<16x128xf32>
    %c39_i32 = arith.constant 39 : i32
    %314 = vector.broadcast %c39_i32 : i32 to vector<16x1xi32>
    %315 = arith.cmpi eq, %0, %314 : vector<16x1xi32>
    %c39 = arith.constant 39 : index
    %c0_41 = arith.constant 0 : index
    %316 = vector.load %arg2[%c39, %c0_41] : memref<64x128xf32, #tpu.memory_space<vmem>>, vector<1x128xf32>
    %317 = vector.shape_cast %315 : vector<16x1xi1> to vector<16x1xi1>
    %318 = vector.broadcast %317 : vector<16x1xi1> to vector<16x128xi1>
    %319 = vector.shape_cast %316 : vector<1x128xf32> to vector<1x128xf32>
    %320 = vector.broadcast %319 : vector<1x128xf32> to vector<16x128xf32>
    %321 = arith.select %318, %320, %313 : vector<16x128xi1>, vector<16x128xf32>
    %c40_i32 = arith.constant 40 : i32
    %322 = vector.broadcast %c40_i32 : i32 to vector<16x1xi32>
    %323 = arith.cmpi eq, %0, %322 : vector<16x1xi32>
    %c40 = arith.constant 40 : index
    %c0_42 = arith.constant 0 : index
    %324 = vector.load %arg2[%c40, %c0_42] : memref<64x128xf32, #tpu.memory_space<vmem>>, vector<1x128xf32>
    %325 = vector.shape_cast %323 : vector<16x1xi1> to vector<16x1xi1>
    %326 = vector.broadcast %325 : vector<16x1xi1> to vector<16x128xi1>
    %327 = vector.shape_cast %324 : vector<1x128xf32> to vector<1x128xf32>
    %328 = vector.broadcast %327 : vector<1x128xf32> to vector<16x128xf32>
    %329 = arith.select %326, %328, %321 : vector<16x128xi1>, vector<16x128xf32>
    %c41_i32 = arith.constant 41 : i32
    %330 = vector.broadcast %c41_i32 : i32 to vector<16x1xi32>
    %331 = arith.cmpi eq, %0, %330 : vector<16x1xi32>
    %c41 = arith.constant 41 : index
    %c0_43 = arith.constant 0 : index
    %332 = vector.load %arg2[%c41, %c0_43] : memref<64x128xf32, #tpu.memory_space<vmem>>, vector<1x128xf32>
    %333 = vector.shape_cast %331 : vector<16x1xi1> to vector<16x1xi1>
    %334 = vector.broadcast %333 : vector<16x1xi1> to vector<16x128xi1>
    %335 = vector.shape_cast %332 : vector<1x128xf32> to vector<1x128xf32>
    %336 = vector.broadcast %335 : vector<1x128xf32> to vector<16x128xf32>
    %337 = arith.select %334, %336, %329 : vector<16x128xi1>, vector<16x128xf32>
    %c42_i32 = arith.constant 42 : i32
    %338 = vector.broadcast %c42_i32 : i32 to vector<16x1xi32>
    %339 = arith.cmpi eq, %0, %338 : vector<16x1xi32>
    %c42 = arith.constant 42 : index
    %c0_44 = arith.constant 0 : index
    %340 = vector.load %arg2[%c42, %c0_44] : memref<64x128xf32, #tpu.memory_space<vmem>>, vector<1x128xf32>
    %341 = vector.shape_cast %339 : vector<16x1xi1> to vector<16x1xi1>
    %342 = vector.broadcast %341 : vector<16x1xi1> to vector<16x128xi1>
    %343 = vector.shape_cast %340 : vector<1x128xf32> to vector<1x128xf32>
    %344 = vector.broadcast %343 : vector<1x128xf32> to vector<16x128xf32>
    %345 = arith.select %342, %344, %337 : vector<16x128xi1>, vector<16x128xf32>
    %c43_i32 = arith.constant 43 : i32
    %346 = vector.broadcast %c43_i32 : i32 to vector<16x1xi32>
    %347 = arith.cmpi eq, %0, %346 : vector<16x1xi32>
    %c43 = arith.constant 43 : index
    %c0_45 = arith.constant 0 : index
    %348 = vector.load %arg2[%c43, %c0_45] : memref<64x128xf32, #tpu.memory_space<vmem>>, vector<1x128xf32>
    %349 = vector.shape_cast %347 : vector<16x1xi1> to vector<16x1xi1>
    %350 = vector.broadcast %349 : vector<16x1xi1> to vector<16x128xi1>
    %351 = vector.shape_cast %348 : vector<1x128xf32> to vector<1x128xf32>
    %352 = vector.broadcast %351 : vector<1x128xf32> to vector<16x128xf32>
    %353 = arith.select %350, %352, %345 : vector<16x128xi1>, vector<16x128xf32>
    %c44_i32 = arith.constant 44 : i32
    %354 = vector.broadcast %c44_i32 : i32 to vector<16x1xi32>
    %355 = arith.cmpi eq, %0, %354 : vector<16x1xi32>
    %c44 = arith.constant 44 : index
    %c0_46 = arith.constant 0 : index
    %356 = vector.load %arg2[%c44, %c0_46] : memref<64x128xf32, #tpu.memory_space<vmem>>, vector<1x128xf32>
    %357 = vector.shape_cast %355 : vector<16x1xi1> to vector<16x1xi1>
    %358 = vector.broadcast %357 : vector<16x1xi1> to vector<16x128xi1>
    %359 = vector.shape_cast %356 : vector<1x128xf32> to vector<1x128xf32>
    %360 = vector.broadcast %359 : vector<1x128xf32> to vector<16x128xf32>
    %361 = arith.select %358, %360, %353 : vector<16x128xi1>, vector<16x128xf32>
    %c45_i32 = arith.constant 45 : i32
    %362 = vector.broadcast %c45_i32 : i32 to vector<16x1xi32>
    %363 = arith.cmpi eq, %0, %362 : vector<16x1xi32>
    %c45 = arith.constant 45 : index
    %c0_47 = arith.constant 0 : index
    %364 = vector.load %arg2[%c45, %c0_47] : memref<64x128xf32, #tpu.memory_space<vmem>>, vector<1x128xf32>
    %365 = vector.shape_cast %363 : vector<16x1xi1> to vector<16x1xi1>
    %366 = vector.broadcast %365 : vector<16x1xi1> to vector<16x128xi1>
    %367 = vector.shape_cast %364 : vector<1x128xf32> to vector<1x128xf32>
    %368 = vector.broadcast %367 : vector<1x128xf32> to vector<16x128xf32>
    %369 = arith.select %366, %368, %361 : vector<16x128xi1>, vector<16x128xf32>
    %c46_i32 = arith.constant 46 : i32
    %370 = vector.broadcast %c46_i32 : i32 to vector<16x1xi32>
    %371 = arith.cmpi eq, %0, %370 : vector<16x1xi32>
    %c46 = arith.constant 46 : index
    %c0_48 = arith.constant 0 : index
    %372 = vector.load %arg2[%c46, %c0_48] : memref<64x128xf32, #tpu.memory_space<vmem>>, vector<1x128xf32>
    %373 = vector.shape_cast %371 : vector<16x1xi1> to vector<16x1xi1>
    %374 = vector.broadcast %373 : vector<16x1xi1> to vector<16x128xi1>
    %375 = vector.shape_cast %372 : vector<1x128xf32> to vector<1x128xf32>
    %376 = vector.broadcast %375 : vector<1x128xf32> to vector<16x128xf32>
    %377 = arith.select %374, %376, %369 : vector<16x128xi1>, vector<16x128xf32>
    %c47_i32 = arith.constant 47 : i32
    %378 = vector.broadcast %c47_i32 : i32 to vector<16x1xi32>
    %379 = arith.cmpi eq, %0, %378 : vector<16x1xi32>
    %c47 = arith.constant 47 : index
    %c0_49 = arith.constant 0 : index
    %380 = vector.load %arg2[%c47, %c0_49] : memref<64x128xf32, #tpu.memory_space<vmem>>, vector<1x128xf32>
    %381 = vector.shape_cast %379 : vector<16x1xi1> to vector<16x1xi1>
    %382 = vector.broadcast %381 : vector<16x1xi1> to vector<16x128xi1>
    %383 = vector.shape_cast %380 : vector<1x128xf32> to vector<1x128xf32>
    %384 = vector.broadcast %383 : vector<1x128xf32> to vector<16x128xf32>
    %385 = arith.select %382, %384, %377 : vector<16x128xi1>, vector<16x128xf32>
    %c48_i32 = arith.constant 48 : i32
    %386 = vector.broadcast %c48_i32 : i32 to vector<16x1xi32>
    %387 = arith.cmpi eq, %0, %386 : vector<16x1xi32>
    %c48 = arith.constant 48 : index
    %c0_50 = arith.constant 0 : index
    %388 = vector.load %arg2[%c48, %c0_50] : memref<64x128xf32, #tpu.memory_space<vmem>>, vector<1x128xf32>
    %389 = vector.shape_cast %387 : vector<16x1xi1> to vector<16x1xi1>
    %390 = vector.broadcast %389 : vector<16x1xi1> to vector<16x128xi1>
    %391 = vector.shape_cast %388 : vector<1x128xf32> to vector<1x128xf32>
    %392 = vector.broadcast %391 : vector<1x128xf32> to vector<16x128xf32>
    %393 = arith.select %390, %392, %385 : vector<16x128xi1>, vector<16x128xf32>
    %c49_i32 = arith.constant 49 : i32
    %394 = vector.broadcast %c49_i32 : i32 to vector<16x1xi32>
    %395 = arith.cmpi eq, %0, %394 : vector<16x1xi32>
    %c49 = arith.constant 49 : index
    %c0_51 = arith.constant 0 : index
    %396 = vector.load %arg2[%c49, %c0_51] : memref<64x128xf32, #tpu.memory_space<vmem>>, vector<1x128xf32>
    %397 = vector.shape_cast %395 : vector<16x1xi1> to vector<16x1xi1>
    %398 = vector.broadcast %397 : vector<16x1xi1> to vector<16x128xi1>
    %399 = vector.shape_cast %396 : vector<1x128xf32> to vector<1x128xf32>
    %400 = vector.broadcast %399 : vector<1x128xf32> to vector<16x128xf32>
    %401 = arith.select %398, %400, %393 : vector<16x128xi1>, vector<16x128xf32>
    %c50_i32 = arith.constant 50 : i32
    %402 = vector.broadcast %c50_i32 : i32 to vector<16x1xi32>
    %403 = arith.cmpi eq, %0, %402 : vector<16x1xi32>
    %c50 = arith.constant 50 : index
    %c0_52 = arith.constant 0 : index
    %404 = vector.load %arg2[%c50, %c0_52] : memref<64x128xf32, #tpu.memory_space<vmem>>, vector<1x128xf32>
    %405 = vector.shape_cast %403 : vector<16x1xi1> to vector<16x1xi1>
    %406 = vector.broadcast %405 : vector<16x1xi1> to vector<16x128xi1>
    %407 = vector.shape_cast %404 : vector<1x128xf32> to vector<1x128xf32>
    %408 = vector.broadcast %407 : vector<1x128xf32> to vector<16x128xf32>
    %409 = arith.select %406, %408, %401 : vector<16x128xi1>, vector<16x128xf32>
    %c51_i32 = arith.constant 51 : i32
    %410 = vector.broadcast %c51_i32 : i32 to vector<16x1xi32>
    %411 = arith.cmpi eq, %0, %410 : vector<16x1xi32>
    %c51 = arith.constant 51 : index
    %c0_53 = arith.constant 0 : index
    %412 = vector.load %arg2[%c51, %c0_53] : memref<64x128xf32, #tpu.memory_space<vmem>>, vector<1x128xf32>
    %413 = vector.shape_cast %411 : vector<16x1xi1> to vector<16x1xi1>
    %414 = vector.broadcast %413 : vector<16x1xi1> to vector<16x128xi1>
    %415 = vector.shape_cast %412 : vector<1x128xf32> to vector<1x128xf32>
    %416 = vector.broadcast %415 : vector<1x128xf32> to vector<16x128xf32>
    %417 = arith.select %414, %416, %409 : vector<16x128xi1>, vector<16x128xf32>
    %c52_i32 = arith.constant 52 : i32
    %418 = vector.broadcast %c52_i32 : i32 to vector<16x1xi32>
    %419 = arith.cmpi eq, %0, %418 : vector<16x1xi32>
    %c52 = arith.constant 52 : index
    %c0_54 = arith.constant 0 : index
    %420 = vector.load %arg2[%c52, %c0_54] : memref<64x128xf32, #tpu.memory_space<vmem>>, vector<1x128xf32>
    %421 = vector.shape_cast %419 : vector<16x1xi1> to vector<16x1xi1>
    %422 = vector.broadcast %421 : vector<16x1xi1> to vector<16x128xi1>
    %423 = vector.shape_cast %420 : vector<1x128xf32> to vector<1x128xf32>
    %424 = vector.broadcast %423 : vector<1x128xf32> to vector<16x128xf32>
    %425 = arith.select %422, %424, %417 : vector<16x128xi1>, vector<16x128xf32>
    %c53_i32 = arith.constant 53 : i32
    %426 = vector.broadcast %c53_i32 : i32 to vector<16x1xi32>
    %427 = arith.cmpi eq, %0, %426 : vector<16x1xi32>
    %c53 = arith.constant 53 : index
    %c0_55 = arith.constant 0 : index
    %428 = vector.load %arg2[%c53, %c0_55] : memref<64x128xf32, #tpu.memory_space<vmem>>, vector<1x128xf32>
    %429 = vector.shape_cast %427 : vector<16x1xi1> to vector<16x1xi1>
    %430 = vector.broadcast %429 : vector<16x1xi1> to vector<16x128xi1>
    %431 = vector.shape_cast %428 : vector<1x128xf32> to vector<1x128xf32>
    %432 = vector.broadcast %431 : vector<1x128xf32> to vector<16x128xf32>
    %433 = arith.select %430, %432, %425 : vector<16x128xi1>, vector<16x128xf32>
    %c54_i32 = arith.constant 54 : i32
    %434 = vector.broadcast %c54_i32 : i32 to vector<16x1xi32>
    %435 = arith.cmpi eq, %0, %434 : vector<16x1xi32>
    %c54 = arith.constant 54 : index
    %c0_56 = arith.constant 0 : index
    %436 = vector.load %arg2[%c54, %c0_56] : memref<64x128xf32, #tpu.memory_space<vmem>>, vector<1x128xf32>
    %437 = vector.shape_cast %435 : vector<16x1xi1> to vector<16x1xi1>
    %438 = vector.broadcast %437 : vector<16x1xi1> to vector<16x128xi1>
    %439 = vector.shape_cast %436 : vector<1x128xf32> to vector<1x128xf32>
    %440 = vector.broadcast %439 : vector<1x128xf32> to vector<16x128xf32>
    %441 = arith.select %438, %440, %433 : vector<16x128xi1>, vector<16x128xf32>
    %c55_i32 = arith.constant 55 : i32
    %442 = vector.broadcast %c55_i32 : i32 to vector<16x1xi32>
    %443 = arith.cmpi eq, %0, %442 : vector<16x1xi32>
    %c55 = arith.constant 55 : index
    %c0_57 = arith.constant 0 : index
    %444 = vector.load %arg2[%c55, %c0_57] : memref<64x128xf32, #tpu.memory_space<vmem>>, vector<1x128xf32>
    %445 = vector.shape_cast %443 : vector<16x1xi1> to vector<16x1xi1>
    %446 = vector.broadcast %445 : vector<16x1xi1> to vector<16x128xi1>
    %447 = vector.shape_cast %444 : vector<1x128xf32> to vector<1x128xf32>
    %448 = vector.broadcast %447 : vector<1x128xf32> to vector<16x128xf32>
    %449 = arith.select %446, %448, %441 : vector<16x128xi1>, vector<16x128xf32>
    %c56_i32 = arith.constant 56 : i32
    %450 = vector.broadcast %c56_i32 : i32 to vector<16x1xi32>
    %451 = arith.cmpi eq, %0, %450 : vector<16x1xi32>
    %c56 = arith.constant 56 : index
    %c0_58 = arith.constant 0 : index
    %452 = vector.load %arg2[%c56, %c0_58] : memref<64x128xf32, #tpu.memory_space<vmem>>, vector<1x128xf32>
    %453 = vector.shape_cast %451 : vector<16x1xi1> to vector<16x1xi1>
    %454 = vector.broadcast %453 : vector<16x1xi1> to vector<16x128xi1>
    %455 = vector.shape_cast %452 : vector<1x128xf32> to vector<1x128xf32>
    %456 = vector.broadcast %455 : vector<1x128xf32> to vector<16x128xf32>
    %457 = arith.select %454, %456, %449 : vector<16x128xi1>, vector<16x128xf32>
    %c57_i32 = arith.constant 57 : i32
    %458 = vector.broadcast %c57_i32 : i32 to vector<16x1xi32>
    %459 = arith.cmpi eq, %0, %458 : vector<16x1xi32>
    %c57 = arith.constant 57 : index
    %c0_59 = arith.constant 0 : index
    %460 = vector.load %arg2[%c57, %c0_59] : memref<64x128xf32, #tpu.memory_space<vmem>>, vector<1x128xf32>
    %461 = vector.shape_cast %459 : vector<16x1xi1> to vector<16x1xi1>
    %462 = vector.broadcast %461 : vector<16x1xi1> to vector<16x128xi1>
    %463 = vector.shape_cast %460 : vector<1x128xf32> to vector<1x128xf32>
    %464 = vector.broadcast %463 : vector<1x128xf32> to vector<16x128xf32>
    %465 = arith.select %462, %464, %457 : vector<16x128xi1>, vector<16x128xf32>
    %c58_i32 = arith.constant 58 : i32
    %466 = vector.broadcast %c58_i32 : i32 to vector<16x1xi32>
    %467 = arith.cmpi eq, %0, %466 : vector<16x1xi32>
    %c58 = arith.constant 58 : index
    %c0_60 = arith.constant 0 : index
    %468 = vector.load %arg2[%c58, %c0_60] : memref<64x128xf32, #tpu.memory_space<vmem>>, vector<1x128xf32>
    %469 = vector.shape_cast %467 : vector<16x1xi1> to vector<16x1xi1>
    %470 = vector.broadcast %469 : vector<16x1xi1> to vector<16x128xi1>
    %471 = vector.shape_cast %468 : vector<1x128xf32> to vector<1x128xf32>
    %472 = vector.broadcast %471 : vector<1x128xf32> to vector<16x128xf32>
    %473 = arith.select %470, %472, %465 : vector<16x128xi1>, vector<16x128xf32>
    %c59_i32 = arith.constant 59 : i32
    %474 = vector.broadcast %c59_i32 : i32 to vector<16x1xi32>
    %475 = arith.cmpi eq, %0, %474 : vector<16x1xi32>
    %c59 = arith.constant 59 : index
    %c0_61 = arith.constant 0 : index
    %476 = vector.load %arg2[%c59, %c0_61] : memref<64x128xf32, #tpu.memory_space<vmem>>, vector<1x128xf32>
    %477 = vector.shape_cast %475 : vector<16x1xi1> to vector<16x1xi1>
    %478 = vector.broadcast %477 : vector<16x1xi1> to vector<16x128xi1>
    %479 = vector.shape_cast %476 : vector<1x128xf32> to vector<1x128xf32>
    %480 = vector.broadcast %479 : vector<1x128xf32> to vector<16x128xf32>
    %481 = arith.select %478, %480, %473 : vector<16x128xi1>, vector<16x128xf32>
    %c60_i32 = arith.constant 60 : i32
    %482 = vector.broadcast %c60_i32 : i32 to vector<16x1xi32>
    %483 = arith.cmpi eq, %0, %482 : vector<16x1xi32>
    %c60 = arith.constant 60 : index
    %c0_62 = arith.constant 0 : index
    %484 = vector.load %arg2[%c60, %c0_62] : memref<64x128xf32, #tpu.memory_space<vmem>>, vector<1x128xf32>
    %485 = vector.shape_cast %483 : vector<16x1xi1> to vector<16x1xi1>
    %486 = vector.broadcast %485 : vector<16x1xi1> to vector<16x128xi1>
    %487 = vector.shape_cast %484 : vector<1x128xf32> to vector<1x128xf32>
    %488 = vector.broadcast %487 : vector<1x128xf32> to vector<16x128xf32>
    %489 = arith.select %486, %488, %481 : vector<16x128xi1>, vector<16x128xf32>
    %c61_i32 = arith.constant 61 : i32
    %490 = vector.broadcast %c61_i32 : i32 to vector<16x1xi32>
    %491 = arith.cmpi eq, %0, %490 : vector<16x1xi32>
    %c61 = arith.constant 61 : index
    %c0_63 = arith.constant 0 : index
    %492 = vector.load %arg2[%c61, %c0_63] : memref<64x128xf32, #tpu.memory_space<vmem>>, vector<1x128xf32>
    %493 = vector.shape_cast %491 : vector<16x1xi1> to vector<16x1xi1>
    %494 = vector.broadcast %493 : vector<16x1xi1> to vector<16x128xi1>
    %495 = vector.shape_cast %492 : vector<1x128xf32> to vector<1x128xf32>
    %496 = vector.broadcast %495 : vector<1x128xf32> to vector<16x128xf32>
    %497 = arith.select %494, %496, %489 : vector<16x128xi1>, vector<16x128xf32>
    %c62_i32 = arith.constant 62 : i32
    %498 = vector.broadcast %c62_i32 : i32 to vector<16x1xi32>
    %499 = arith.cmpi eq, %0, %498 : vector<16x1xi32>
    %c62 = arith.constant 62 : index
    %c0_64 = arith.constant 0 : index
    %500 = vector.load %arg2[%c62, %c0_64] : memref<64x128xf32, #tpu.memory_space<vmem>>, vector<1x128xf32>
    %501 = vector.shape_cast %499 : vector<16x1xi1> to vector<16x1xi1>
    %502 = vector.broadcast %501 : vector<16x1xi1> to vector<16x128xi1>
    %503 = vector.shape_cast %500 : vector<1x128xf32> to vector<1x128xf32>
    %504 = vector.broadcast %503 : vector<1x128xf32> to vector<16x128xf32>
    %505 = arith.select %502, %504, %497 : vector<16x128xi1>, vector<16x128xf32>
    %c63_i32 = arith.constant 63 : i32
    %506 = vector.broadcast %c63_i32 : i32 to vector<16x1xi32>
    %507 = arith.cmpi eq, %0, %506 : vector<16x1xi32>
    %c63 = arith.constant 63 : index
    %c0_65 = arith.constant 0 : index
    %508 = vector.load %arg2[%c63, %c0_65] : memref<64x128xf32, #tpu.memory_space<vmem>>, vector<1x128xf32>
    %509 = vector.shape_cast %507 : vector<16x1xi1> to vector<16x1xi1>
    %510 = vector.broadcast %509 : vector<16x1xi1> to vector<16x128xi1>
    %511 = vector.shape_cast %508 : vector<1x128xf32> to vector<1x128xf32>
    %512 = vector.broadcast %511 : vector<1x128xf32> to vector<16x128xf32>
    %513 = arith.select %510, %512, %505 : vector<16x128xi1>, vector<16x128xf32>
    %c0_66 = arith.constant 0 : index
    %c0_67 = arith.constant 0 : index
    %514 = vector.load %arg3[%c0_66, %c0_67] : memref<16x128xf32, #tpu.memory_space<vmem>>, vector<16x128xf32>
    tpu.vector_store %arg3[%c0_66, %c0_67], %513 {strides = array<i32>} : memref<16x128xf32, #tpu.memory_space<vmem>>, vector<16x128xf32>,
    return
  }
  func.func @transform_0(%arg0: i32) -> (i32, i32) {
    %c0_i32 = arith.constant 0 : i32
    %c0_i32_0 = arith.constant 0 : i32
    return %arg0, %c0_i32 : i32, i32
  }
  func.func @transform_1(%arg0: i32) -> (i32, i32) {
    %c0_i32 = arith.constant 0 : i32
    %c0_i32_0 = arith.constant 0 : i32
    %c0_i32_1 = arith.constant 0 : i32
    return %c0_i32, %c0_i32_0 : i32, i32
  }
  func.func @transform_2(%arg0: i32) -> (i32, i32) {
    %c0_i32 = arith.constant 0 : i32
    %c0_i32_0 = arith.constant 0 : i32
    return %arg0, %c0_i32 : i32, i32
  }
}

</mosaic_0001>

<bundles_post_ra>
// kernel: tpu_custom_call.1
= control target key start
LH: loop header
LB: loop body
LE: loop exit
PB: predicated region body
PF: predicated region fallthrough
CT: control target
= control target key end

     0   :  { %7 = vsyncpa [#allocation3], 0  ;;  %s1599_s0 = inlined_call_operand.vmem [shape: s32[16,1], index: 0, kind: input, shape index: {}]   ;;  %s1600_s1 = inlined_call_operand.hbm [shape: f32[64,128], index: 1, kind: input, shape index: {}]   ;;  %s1601_s2 = inlined_call_operand.hbm [shape: f32[16,128], index: 2, kind: output, shape index: {}]  }
   0x1   :  { %8 = vsyncpa [#allocation4], 0  ;;  %s15_s11 = sshll.u32 %s1600_s1, 4  ;;  %s1201_s12 = smov [#allocation2]   ;;  %s16_s11 = int_to_ptr.hbm [resolvable:$true] %s15_s11 }
   0x2   :  { %s17_s13 = sshll.u32 %s1201_s12, 4  ;;  %s1202_s14 = smov 128   ;;  %s18_s13 = int_to_ptr.vmem [resolvable:$true] %s17_s13 }
   0x3   :  { %s1203_s15 = smov 8  }
   0x4   :  { %23 = dma.hbm_to_vmem [thread:$0]  %s16_s11, 1024, %s18_s13, [#allocation3], %s1202_s14, %s1202_s14, %s1203_s15  }
   0x5   :  { %1197 = dma.done.wait [#allocation3], 1024  }
   0x6   :  { %1198 = vsyncadd [#allocation3], 4294966272  ;;  %v1204_v0 = vmov 0   ;;  %v1233_v1 = vld [vmem:[%s1599_s0] sm:$0xff]  ;;  %v1241_v2 = vld [vmem:[%s1599_s0 + $0x8] sm:$0xff]  ;;  %s1062_s26 = sshll.u32 %s1601_s2, 4  ;;  %s1063_s26 = int_to_ptr.hbm [resolvable:$true] %s1062_s26 }
   0x7   :  { %1082 = vset.pattern.permute.xlu2 %v1204_v0  ;;  %1081 = vset.pattern.permute.xlu1 %v1204_v0  ;;  %vm62_vm0 = vcmp.eq.s32.totalorder %v1233_v1, 2  ;;  %vm46_vm1 = vcmp.eq.s32.totalorder %v1233_v1, 1  ;;  %vm30_vm2 = vcmp.eq.s32.totalorder %v1233_v1, 0  ;;  %vm63_vm3 = vcmp.eq.s32.totalorder %v1241_v2, 2  ;;  %v1083_v51 = vld [vmem:[#allocation2] ss:$0 sm:$0xff] }
   0x8   :  { %1080 = vset.pattern.permute.xlu0 %v1204_v0  ;;  %v65_v3 = vsel %vm62_vm0, 1, %v1204_v0  ;;  %v49_v4 = vsel %vm46_vm1, 1, %v1204_v0  ;;  %v33_v5 = vsel %vm30_vm2, 1, %v1204_v0  ;;  %vm47_vm4 = vcmp.eq.s32.totalorder %v1241_v2, 1  ;;  %v1084_v54 = vld [vmem:[#allocation2 + $0x1] ss:$0 sm:$0xff] }
   0x9   :  { %68 = vperm.xlu2 %1082, %v65_v3   ;;  %52 = vperm.xlu1 %1081, %v49_v4   ;;  %vm31_vm5 = vcmp.eq.s32.totalorder %v1241_v2, 0  ;;  %v66_v6 = vsel %vm63_vm3, 1, %v1204_v0  ;;  %v50_v7 = vsel %vm47_vm4, 1, %v1204_v0  ;;  %vm94_vm6 = vcmp.eq.s32.totalorder %v1233_v1, 4  ;;  %v1085_v55 = vld [vmem:[#allocation2 + $0x2] ss:$0 sm:$0xff] }
   0xa   :  { %36 = vperm.xlu0 %1080, %v33_v5   ;;  %v34_v8 = vsel %vm31_vm5, 1, %v1204_v0  ;;  %vm79_vm7 = vcmp.eq.s32.totalorder %v1241_v2, 3  ;;  %vm78_vm8 = vcmp.eq.s32.totalorder %v1233_v1, 3  ;;  %v97_v9 = vsel %vm94_vm6, 1, %v1204_v0 }
   0xb   :  { %v82_v10 = vsel %vm79_vm7, 1, %v1204_v0  ;;  %v81_v11 = vsel %vm78_vm8, 1, %v1204_v0  ;;  %vm111_vm9 = vcmp.eq.s32.totalorder %v1241_v2, 5  ;;  %vm110_vm10 = vcmp.eq.s32.totalorder %v1233_v1, 5 }
   0xc   :  { %vm95_vm11 = vcmp.eq.s32.totalorder %v1241_v2, 4  ;;  %v114_v12 = vsel %vm111_vm9, 1, %v1204_v0  ;;  %v113_v13 = vsel %vm110_vm10, 1, %v1204_v0  ;;  %vm142_vm12 = vcmp.eq.s32.totalorder %v1233_v1, 7 }
   0xd   :  { %v98_v14 = vsel %vm95_vm11, 1, %v1204_v0  ;;  %vm127_vm13 = vcmp.eq.s32.totalorder %v1241_v2, 6  ;;  %vm126_vm14 = vcmp.eq.s32.totalorder %v1233_v1, 6  ;;  %v145_v15 = vsel %vm142_vm12, 1, %v1204_v0 }
   0xe   :  { %v130_v16 = vsel %vm127_vm13, 1, %v1204_v0  ;;  %v129_v17 = vsel %vm126_vm14, 1, %v1204_v0  ;;  %vm159_vm15 = vcmp.eq.s32.totalorder %v1241_v2, 8  ;;  %vm158_vm0 = vcmp.eq.s32.totalorder %v1233_v1, 8 }
   0xf   :  { %vm143_vm1 = vcmp.eq.s32.totalorder %v1241_v2, 7  ;;  %v162_v18 = vsel %vm159_vm15, 1, %v1204_v0  ;;  %v161_v19 = vsel %vm158_vm0, 1, %v1204_v0  ;;  %vm190_vm2 = vcmp.eq.s32.totalorder %v1233_v1, 10 }
  0x10   :  { %v146_v20 = vsel %vm143_vm1, 1, %v1204_v0  ;;  %vm175_vm3 = vcmp.eq.s32.totalorder %v1241_v2, 9  ;;  %vm174_vm4 = vcmp.eq.s32.totalorder %v1233_v1, 9  ;;  %v193_v21 = vsel %vm190_vm2, 1, %v1204_v0 }
  0x11   :  { %71 = vperm.xlu2 %1082, %v66_v6   ;;  %55 = vperm.xlu1 %1081, %v50_v7   ;;  %v178_v22 = vsel %vm175_vm3, 1, %v1204_v0  ;;  %v177_v23 = vsel %vm174_vm4, 1, %v1204_v0  ;;  %vm207_vm5 = vcmp.eq.s32.totalorder %v1241_v2, 11  ;;  %vm206_vm6 = vcmp.eq.s32.totalorder %v1233_v1, 11 }
  0x12   :  { %39 = vperm.xlu0 %1080, %v34_v8   ;;  %vm191_vm7 = vcmp.eq.s32.totalorder %v1241_v2, 10  ;;  %v210_v24 = vsel %vm207_vm5, 1, %v1204_v0  ;;  %v209_v25 = vsel %vm206_vm6, 1, %v1204_v0  ;;  %vm238_vm8 = vcmp.eq.s32.totalorder %v1233_v1, 13 }
  0x13   :  { %v194_v26 = vsel %vm191_vm7, 1, %v1204_v0  ;;  %vm223_vm9 = vcmp.eq.s32.totalorder %v1241_v2, 12  ;;  %vm222_vm10 = vcmp.eq.s32.totalorder %v1233_v1, 12  ;;  %v241_v27 = vsel %vm238_vm8, 1, %v1204_v0 }
  0x14   :  { %v226_v28 = vsel %vm223_vm9, 1, %v1204_v0  ;;  %v225_v29 = vsel %vm222_vm10, 1, %v1204_v0  ;;  %vm255_vm11 = vcmp.eq.s32.totalorder %v1241_v2, 14  ;;  %vm254_vm12 = vcmp.eq.s32.totalorder %v1233_v1, 14 }
  0x15   :  { %vm239_vm13 = vcmp.eq.s32.totalorder %v1241_v2, 13  ;;  %v258_v30 = vsel %vm255_vm11, 1, %v1204_v0  ;;  %v257_v31 = vsel %vm254_vm12, 1, %v1204_v0  ;;  %vm286_vm14 = vcmp.eq.s32.totalorder %v1233_v1, 16 }
  0x16   :  { %v242_v32 = vsel %vm239_vm13, 1, %v1204_v0  ;;  %vm271_vm15 = vcmp.eq.s32.totalorder %v1241_v2, 15  ;;  %vm270_vm0 = vcmp.eq.s32.totalorder %v1233_v1, 15  ;;  %v289_v33 = vsel %vm286_vm14, 1, %v1204_v0 }
  0x17   :  { %v274_v34 = vsel %vm271_vm15, 1, %v1204_v0  ;;  %v273_v35 = vsel %vm270_vm0, 1, %v1204_v0  ;;  %vm303_vm1 = vcmp.eq.s32.totalorder %v1241_v2, 17  ;;  %vm302_vm2 = vcmp.eq.s32.totalorder %v1233_v1, 17 }
  0x18   :  { %vm287_vm3 = vcmp.eq.s32.totalorder %v1241_v2, 16  ;;  %v306_v36 = vsel %vm303_vm1, 1, %v1204_v0  ;;  %v305_v37 = vsel %vm302_vm2, 1, %v1204_v0  ;;  %vm334_vm4 = vcmp.eq.s32.totalorder %v1233_v1, 19 }
  0x19   :  { %100 = vperm.xlu2 %1082, %v97_v9   ;;  %87 = vperm.xlu1 %1081, %v82_v10   ;;  %v290_v38 = vsel %vm287_vm3, 1, %v1204_v0  ;;  %vm319_vm5 = vcmp.eq.s32.totalorder %v1241_v2, 18  ;;  %vm318_vm6 = vcmp.eq.s32.totalorder %v1233_v1, 18  ;;  %v337_v40 = vsel %vm334_vm4, 1, %v1204_v0 }
  0x1a   :  { %84 = vperm.xlu0 %1080, %v81_v11   ;;  %v322_v41 = vsel %vm319_vm5, 1, %v1204_v0  ;;  %v321_v42 = vsel %vm318_vm6, 1, %v1204_v0  ;;  %vm351_vm7 = vcmp.eq.s32.totalorder %v1241_v2, 20  ;;  %vm350_vm8 = vcmp.eq.s32.totalorder %v1233_v1, 20  ;;  %v1086_v11 = vld [vmem:[#allocation2 + $0x3] ss:$0 sm:$0xff] }
  0x1b   :  { %vm335_vm9 = vcmp.eq.s32.totalorder %v1241_v2, 19  ;;  %v354_v44 = vsel %vm351_vm7, 1, %v1204_v0  ;;  %v353_v45 = vsel %vm350_vm8, 1, %v1204_v0  ;;  %vm382_vm10 = vcmp.eq.s32.totalorder %v1233_v1, 22 }
  0x1c   :  { %v338_v46 = vsel %vm335_vm9, 1, %v1204_v0  ;;  %vm367_vm11 = vcmp.eq.s32.totalorder %v1241_v2, 21  ;;  %vm366_vm12 = vcmp.eq.s32.totalorder %v1233_v1, 21  ;;  %v385_v48 = vsel %vm382_vm10, 1, %v1204_v0 }
  0x1d   :  { %v370_v49 = vsel %vm367_vm11, 1, %v1204_v0  ;;  %v369_v50 = vsel %vm366_vm12, 1, %v1204_v0  ;;  %vm399_vm13 = vcmp.eq.s32.totalorder %v1241_v2, 23  ;;  %vm398_vm14 = vcmp.eq.s32.totalorder %v1233_v1, 23 }
  0x1e   :  { %vm383_vm0 = vcmp.eq.s32.totalorder %v1241_v2, 22  ;;  %v402_v58 = vsel %vm399_vm13, 1, %v1204_v0  ;;  %v401_v59 = vsel %vm398_vm14, 1, %v1204_v0  ;;  %vm430_vm3 = vcmp.eq.s32.totalorder %v1233_v1, 25 }
  0x1f   :  { %v386_v61 = vsel %vm383_vm0, 1, %v1204_v0  ;;  %vm415_vm4 = vcmp.eq.s32.totalorder %v1241_v2, 24  ;;  %vm414_vm6 = vcmp.eq.s32.totalorder %v1233_v1, 24  ;;  %v433_v6 = vsel %vm430_vm3, 1, %v1204_v0 }
  0x20   :  { %v418_v7 = vsel %vm415_vm4, 1, %v1204_v0  ;;  %v417_v9 = vsel %vm414_vm6, 1, %v1204_v0  ;;  %vm447_vm9 = vcmp.eq.s32.totalorder %v1241_v2, 26  ;;  %vm446_vm10 = vcmp.eq.s32.totalorder %v1233_v1, 26 }
  0x21   :  { %119 = vperm.xlu2 %1082, %v114_v12   ;;  %116 = vperm.xlu1 %1081, %v113_v13   ;;  %vm431_vm12 = vcmp.eq.s32.totalorder %v1241_v2, 25  ;;  %vm463_vm0 = vcmp.eq.s32.totalorder %v1241_v2, 27  ;;  %vm494_vm6 = vcmp.eq.s32.totalorder %v1233_v1, 29 }
  0x22   :  { %103 = vperm.xlu0 %1080, %v98_v14   ;;  %v1087_v14 = vld [vmem:[#allocation2 + $0x4] ss:$0 sm:$0xff] }
  0x29   :  { %148 = vperm.xlu2 %1082, %v145_v15   ;;  %135 = vperm.xlu1 %1081, %v130_v16  }
  0x2a   :  { %132 = vperm.xlu0 %1080, %v129_v17  }
  0x31   :  { %167 = vperm.xlu2 %1082, %v162_v18   ;;  %164 = vperm.xlu1 %1081, %v161_v19   ;;  %v450_v18 = vsel %vm447_vm9, 1, %v1204_v0  ;;  %v449_v19 = vsel %vm446_vm10, 1, %v1204_v0 }
  0x32   :  { %151 = vperm.xlu0 %1080, %v146_v20  }
  0x39   :  { %196 = vperm.xlu2 %1082, %v193_v21   ;;  %183 = vperm.xlu1 %1081, %v178_v22   ;;  %v434_v21 = vsel %vm431_vm12, 1, %v1204_v0  ;;  %v1088_v22 = vld [vmem:[#allocation2 + $0x5] ss:$0 sm:$0xff]  ;;  %vm511_vm12 = vcmp.eq.s32.totalorder %v1241_v2, 30 }
  0x3a   :  { %180 = vperm.xlu0 %1080, %v177_v23  }
  0x41   :  { %215 = vperm.xlu2 %1082, %v210_v24   ;;  %212 = vperm.xlu1 %1081, %v209_v25  }
  0x42   :  { %199 = vperm.xlu0 %1080, %v194_v26  }
  0x49   :  { %244 = vperm.xlu2 %1082, %v241_v27   ;;  %231 = vperm.xlu1 %1081, %v226_v28  }
  0x4a   :  { %228 = vperm.xlu0 %1080, %v225_v29   ;;  %v466_v29 = vsel %vm463_vm0, 1, %v1204_v0 }
  0x51   :  { %263 = vperm.xlu2 %1082, %v258_v30   ;;  %260 = vperm.xlu1 %1081, %v257_v31  }
  0x52   :  { %247 = vperm.xlu0 %1080, %v242_v32   ;;  %v1089_v32 = vld [vmem:[#allocation2 + $0x6] ss:$0 sm:$0xff] }
  0x59   :  { %292 = vperm.xlu2 %1082, %v289_v33   ;;  %279 = vperm.xlu1 %1081, %v274_v34  }
  0x5a   :  { %276 = vperm.xlu0 %1080, %v273_v35   ;;  %v1090_v35 = vld [vmem:[#allocation2 + $0x7] ss:$0 sm:$0xff] }
  0x61   :  { %311 = vperm.xlu2 %1082, %v306_v36   ;;  %308 = vperm.xlu1 %1081, %v305_v37  }
  0x62   :  { %295 = vperm.xlu0 %1080, %v290_v38  }
  0x63   :  { %v69_v39 = vpop.permute.xlu2 %68 }
  0x64   :  { %vm73_vm1 = vcmp.eq.s32.totalorder %v69_v39, 1 }
  0x69   :  { %340 = vperm.xlu2 %1082, %v337_v40   ;;  %327 = vperm.xlu1 %1081, %v322_v41   ;;  %v497_v40 = vsel %vm494_vm6, 1, %v1204_v0 }
  0x6a   :  { %324 = vperm.xlu0 %1080, %v321_v42  }
  0x6b   :  { %v72_v43 = vpop.permute.xlu2 %71 }
  0x6c   :  { %vm74_vm8 = vcmp.eq.s32.totalorder %v72_v43, 1  ;;  %v1091_v43 = vld [vmem:[#allocation2 + $0x8] ss:$0 sm:$0xff] }
  0x71   :  { %359 = vperm.xlu2 %1082, %v354_v44   ;;  %356 = vperm.xlu1 %1081, %v353_v45  }
  0x72   :  { %343 = vperm.xlu0 %1080, %v338_v46  }
  0x73   :  { %v1324_v47 = vpop.permute.xlu2 %100 }
  0x74   :  { %vm105_vm14 = vcmp.eq.s32.totalorder %v1324_v47, 1 }
  0x79   :  { %388 = vperm.xlu2 %1082, %v385_v48   ;;  %375 = vperm.xlu1 %1081, %v370_v49  }
  0x7a   :  { %372 = vperm.xlu0 %1080, %v369_v50   ;;  %v514_v50 = vsel %vm511_vm12, 1, %v1204_v0 }
  0x7b   :  { %v1332_v52 = vpop.permute.xlu2 %119  ;;  %v53_v53 = vpop.permute.xlu1 %52 }
  0x7c   :  { %vm57_vm15 = vcmp.eq.s32.totalorder %v53_v53, 1  ;;  %v37_v56 = vpop.permute.xlu0 %36  ;;  %vm122_vm4 = vcmp.eq.s32.totalorder %v1332_v52, 1  ;;  %v1092_v53 = vld [vmem:[#allocation2 + $0x9] ss:$0 sm:$0xff] }
  0x7d   :  { %vm41_vm2 = vcmp.eq.s32.totalorder %v37_v56, 1  ;;  %v1093_v56 = vld [vmem:[#allocation2 + $0xa] ss:$0 sm:$0xff] }
  0x7e   :  { %v44_v57 = vsel %vm41_vm2, %v1083_v51, 0.0  ;;  %vm462_vm2 = vcmp.eq.s32.totalorder %v1233_v1, 27 }
  0x7f   :  { %v60_v60 = vsel %vm57_vm15, %v1084_v54, %v44_v57  ;;  %vm478_vm15 = vcmp.eq.s32.totalorder %v1233_v1, 28  ;;  %v465_v31 = vsel %vm462_vm2, 1, %v1204_v0  ;;  %vm542_vm2 = vcmp.eq.s32.totalorder %v1233_v1, 32 }
  0x80   :  { %v76_v62 = vsel %vm73_vm1, %v1085_v55, %v60_v60  ;;  %v481_v28 = vsel %vm478_vm15, 1, %v1204_v0 }
  0x81   :  { %407 = vperm.xlu2 %1082, %v402_v58   ;;  %404 = vperm.xlu1 %1081, %v401_v59  }
  0x82   :  { %391 = vperm.xlu0 %1080, %v386_v61   ;;  %v545_v61 = vsel %vm542_vm2, 1, %v1204_v0 }
  0x83   :  { %v1340_v63 = vpop.permute.xlu2 %148  ;;  %v56_v3 = vpop.permute.xlu1 %55 }
  0x84   :  { %vm58_vm5 = vcmp.eq.s32.totalorder %v56_v3, 1  ;;  %v40_v4 = vpop.permute.xlu0 %39  ;;  %vm153_vm10 = vcmp.eq.s32.totalorder %v1340_v63, 1  ;;  %v1094_v3 = vld [vmem:[#allocation2 + $0xb] ss:$0 sm:$0xff] }
  0x85   :  { %vm42_vm7 = vcmp.eq.s32.totalorder %v40_v4, 1 }
  0x86   :  { %v45_v5 = vsel %vm42_vm7, %v1083_v51, 0.0 }
  0x87   :  { %v61_v8 = vsel %vm58_vm5, %v1084_v54, %v45_v5  ;;  %vm495_vm5 = vcmp.eq.s32.totalorder %v1241_v2, 29 }
  0x88   :  { %v77_v10 = vsel %vm74_vm8, %v1085_v55, %v61_v8  ;;  %vm479_vm8 = vcmp.eq.s32.totalorder %v1241_v2, 28  ;;  %v498_v39 = vsel %vm495_vm5, 1, %v1204_v0 }
  0x89   :  { %436 = vperm.xlu2 %1082, %v433_v6   ;;  %423 = vperm.xlu1 %1081, %v418_v7   ;;  %v482_v42 = vsel %vm479_vm8, 1, %v1204_v0  ;;  %vm559_vm8 = vcmp.eq.s32.totalorder %v1241_v2, 33 }
  0x8a   :  { %420 = vperm.xlu0 %1080, %v417_v9  }
  0x8b   :  { %v1348_v12 = vpop.permute.xlu2 %167  ;;  %v88_v13 = vpop.permute.xlu1 %87 }
  0x8c   :  { %vm90_vm11 = vcmp.eq.s32.totalorder %v88_v13, 1  ;;  %v85_v15 = vpop.permute.xlu0 %84  ;;  %vm170_vm0 = vcmp.eq.s32.totalorder %v1348_v12, 1  ;;  %v1095_v13 = vld [vmem:[#allocation2 + $0xc] ss:$0 sm:$0xff] }
  0x8d   :  { %v93_v16 = vsel %vm90_vm11, %v1086_v11, %v77_v10  ;;  %vm89_vm13 = vcmp.eq.s32.totalorder %v85_v15, 1  ;;  %vm526_vm11 = vcmp.eq.s32.totalorder %v1233_v1, 31  ;;  %v562_v10 = vsel %vm559_vm8, 1, %v1204_v0 }
  0x8e   :  { %v92_v17 = vsel %vm89_vm13, %v1086_v11, %v76_v62  ;;  %v529_v49 = vsel %vm526_vm11, 1, %v1204_v0 }
  0x8f   :  { %v108_v20 = vsel %vm105_vm14, %v1087_v14, %v92_v17  ;;  %vm510_vm14 = vcmp.eq.s32.totalorder %v1233_v1, 30 }
  0x90   :  { %v513_v52 = vsel %vm510_vm14, 1, %v1204_v0  ;;  %vm590_vm14 = vcmp.eq.s32.totalorder %v1233_v1, 35 }
  0x91   :  { %455 = vperm.xlu2 %1082, %v450_v18   ;;  %452 = vperm.xlu1 %1081, %v449_v19  }
  0x92   :  { %439 = vperm.xlu0 %1080, %v434_v21   ;;  %v593_v21 = vsel %vm590_vm14, 1, %v1204_v0 }
  0x93   :  { %v1357_v23 = vpop.permute.xlu2 %196  ;;  %v117_v24 = vpop.permute.xlu1 %116 }
  0x94   :  { %vm121_vm1 = vcmp.eq.s32.totalorder %v117_v24, 1  ;;  %v104_v25 = vpop.permute.xlu0 %103  ;;  %vm201_vm6 = vcmp.eq.s32.totalorder %v1357_v23, 1  ;;  %v1097_v24 = vld [vmem:[#allocation2 + $0xe] ss:$0 sm:$0xff] }
  0x95   :  { %v124_v26 = vsel %vm121_vm1, %v1088_v22, %v108_v20  ;;  %vm106_vm3 = vcmp.eq.s32.totalorder %v104_v25, 1  ;;  %vm543_vm1 = vcmp.eq.s32.totalorder %v1241_v2, 32 }
  0x96   :  { %v109_v27 = vsel %vm106_vm3, %v1087_v14, %v93_v16  ;;  %v546_v60 = vsel %vm543_vm1, 1, %v1204_v0  ;;  %v1096_v16 = vld [vmem:[#allocation2 + $0xd] ss:$0 sm:$0xff] }
  0x97   :  { %v125_v30 = vsel %vm122_vm4, %v1088_v22, %v109_v27  ;;  %vm527_vm4 = vcmp.eq.s32.totalorder %v1241_v2, 31 }
  0x98   :  { %v530_v63 = vsel %vm527_vm4, 1, %v1204_v0  ;;  %vm607_vm4 = vcmp.eq.s32.totalorder %v1241_v2, 36 }
  0x99   :  { %484 = vperm.xlu2 %1082, %v481_v28   ;;  %471 = vperm.xlu1 %1081, %v466_v29  }
  0x9a   :  { %468 = vperm.xlu0 %1080, %v465_v31   ;;  %v610_v31 = vsel %vm607_vm4, 1, %v1204_v0 }
  0x9b   :  { %v1366_v33 = vpop.permute.xlu2 %215  ;;  %v136_v34 = vpop.permute.xlu1 %135 }
  0x9c   :  { %vm138_vm7 = vcmp.eq.s32.totalorder %v136_v34, 1  ;;  %v133_v36 = vpop.permute.xlu0 %132  ;;  %vm218_vm12 = vcmp.eq.s32.totalorder %v1366_v33, 1  ;;  %v1098_v34 = vld [vmem:[#allocation2 + $0xf] ss:$0 sm:$0xff] }
  0x9d   :  { %v141_v37 = vsel %vm138_vm7, %v1089_v32, %v125_v30  ;;  %vm137_vm9 = vcmp.eq.s32.totalorder %v133_v36, 1  ;;  %vm574_vm7 = vcmp.eq.s32.totalorder %v1233_v1, 34 }
  0x9e   :  { %v140_v38 = vsel %vm137_vm9, %v1089_v32, %v124_v26  ;;  %v577_v9 = vsel %vm574_vm7, 1, %v1204_v0 }
  0x9f   :  { %v156_v41 = vsel %vm153_vm10, %v1090_v35, %v140_v38  ;;  %vm558_vm10 = vcmp.eq.s32.totalorder %v1233_v1, 33 }
  0xa0   :  { %v561_v12 = vsel %vm558_vm10, 1, %v1204_v0  ;;  %vm638_vm10 = vcmp.eq.s32.totalorder %v1233_v1, 38 }
  0xa1   :  { %503 = vperm.xlu2 %1082, %v498_v39   ;;  %500 = vperm.xlu1 %1081, %v497_v40  }
  0xa2   :  { %487 = vperm.xlu0 %1080, %v482_v42   ;;  %v641_v42 = vsel %vm638_vm10, 1, %v1204_v0 }
  0xa3   :  { %v1375_v44 = vpop.permute.xlu2 %244  ;;  %v165_v45 = vpop.permute.xlu1 %164 }
  0xa4   :  { %vm169_vm13 = vcmp.eq.s32.totalorder %v165_v45, 1  ;;  %v152_v46 = vpop.permute.xlu0 %151  ;;  %vm249_vm2 = vcmp.eq.s32.totalorder %v1375_v44, 1  ;;  %v1100_v45 = vld [vmem:[#allocation2 + $0x11] ss:$0 sm:$0xff] }
  0xa5   :  { %v172_v47 = vsel %vm169_vm13, %v1091_v43, %v156_v41  ;;  %vm154_vm15 = vcmp.eq.s32.totalorder %v152_v46, 1  ;;  %vm591_vm13 = vcmp.eq.s32.totalorder %v1241_v2, 35 }
  0xa6   :  { %v157_v48 = vsel %vm154_vm15, %v1090_v35, %v141_v37  ;;  %v594_v20 = vsel %vm591_vm13, 1, %v1204_v0  ;;  %v1099_v37 = vld [vmem:[#allocation2 + $0x10] ss:$0 sm:$0xff] }
  0xa7   :  { %v173_v51 = vsel %vm170_vm0, %v1091_v43, %v157_v48  ;;  %vm575_vm0 = vcmp.eq.s32.totalorder %v1241_v2, 34 }
  0xa8   :  { %v578_v23 = vsel %vm575_vm0, 1, %v1204_v0  ;;  %vm655_vm0 = vcmp.eq.s32.totalorder %v1241_v2, 39 }
  0xa9   :  { %532 = vperm.xlu2 %1082, %v529_v49   ;;  %519 = vperm.xlu1 %1081, %v514_v50  }
  0xaa   :  { %516 = vperm.xlu0 %1080, %v513_v52   ;;  %v658_v52 = vsel %vm655_vm0, 1, %v1204_v0 }
  0xab   :  { %v1384_v54 = vpop.permute.xlu2 %263  ;;  %v184_v55 = vpop.permute.xlu1 %183 }
  0xac   :  { %vm186_vm3 = vcmp.eq.s32.totalorder %v184_v55, 1  ;;  %v181_v57 = vpop.permute.xlu0 %180  ;;  %vm266_vm8 = vcmp.eq.s32.totalorder %v1384_v54, 1  ;;  %v1101_v55 = vld [vmem:[#allocation2 + $0x12] ss:$0 sm:$0xff] }
  0xad   :  { %v189_v58 = vsel %vm186_vm3, %v1092_v53, %v173_v51  ;;  %vm185_vm5 = vcmp.eq.s32.totalorder %v181_v57, 1  ;;  %vm622_vm3 = vcmp.eq.s32.totalorder %v1233_v1, 37 }
  0xae   :  { %v188_v59 = vsel %vm185_vm5, %v1092_v53, %v172_v47  ;;  %v625_v30 = vsel %vm622_vm3, 1, %v1204_v0 }
  0xaf   :  { %v204_v62 = vsel %vm201_vm6, %v1093_v56, %v188_v59  ;;  %vm606_vm6 = vcmp.eq.s32.totalorder %v1233_v1, 36 }
  0xb0   :  { %v609_v33 = vsel %vm606_vm6, 1, %v1204_v0  ;;  %vm686_vm6 = vcmp.eq.s32.totalorder %v1233_v1, 41 }
  0xb1   :  { %551 = vperm.xlu2 %1082, %v546_v60   ;;  %548 = vperm.xlu1 %1081, %v545_v61  }
  0xb2   :  { %535 = vperm.xlu0 %1080, %v530_v63   ;;  %v689_v63 = vsel %vm686_vm6, 1, %v1204_v0 }
  0xb3   :  { %v1393_v4 = vpop.permute.xlu2 %292  ;;  %v213_v5 = vpop.permute.xlu1 %212 }
  0xb4   :  { %vm217_vm9 = vcmp.eq.s32.totalorder %v213_v5, 1  ;;  %v200_v6 = vpop.permute.xlu0 %199  ;;  %vm297_vm14 = vcmp.eq.s32.totalorder %v1393_v4, 1  ;;  %v1103_v5 = vld [vmem:[#allocation2 + $0x14] ss:$0 sm:$0xff] }
  0xb5   :  { %v220_v7 = vsel %vm217_vm9, %v1094_v3, %v204_v62  ;;  %vm202_vm11 = vcmp.eq.s32.totalorder %v200_v6, 1  ;;  %vm639_vm9 = vcmp.eq.s32.totalorder %v1241_v2, 38 }
  0xb6   :  { %v205_v8 = vsel %vm202_vm11, %v1093_v56, %v189_v58  ;;  %v642_v41 = vsel %vm639_vm9, 1, %v1204_v0  ;;  %v1102_v58 = vld [vmem:[#allocation2 + $0x13] ss:$0 sm:$0xff] }
  0xb7   :  { %v221_v11 = vsel %vm218_vm12, %v1094_v3, %v205_v8  ;;  %vm623_vm12 = vcmp.eq.s32.totalorder %v1241_v2, 37 }
  0xb8   :  { %v626_v44 = vsel %vm623_vm12, 1, %v1204_v0  ;;  %vm703_vm12 = vcmp.eq.s32.totalorder %v1241_v2, 42 }
  0xb9   :  { %580 = vperm.xlu2 %1082, %v577_v9   ;;  %567 = vperm.xlu1 %1081, %v562_v10  }
  0xba   :  { %564 = vperm.xlu0 %1080, %v561_v12   ;;  %v706_v12 = vsel %vm703_vm12, 1, %v1204_v0 }
  0xbb   :  { %v1402_v14 = vpop.permute.xlu2 %311  ;;  %v232_v15 = vpop.permute.xlu1 %231 }
  0xbc   :  { %vm234_vm15 = vcmp.eq.s32.totalorder %v232_v15, 1  ;;  %v229_v17 = vpop.permute.xlu0 %228  ;;  %vm314_vm4 = vcmp.eq.s32.totalorder %v1402_v14, 1  ;;  %v1104_v15 = vld [vmem:[#allocation2 + $0x15] ss:$0 sm:$0xff] }
  0xbd   :  { %v237_v18 = vsel %vm234_vm15, %v1095_v13, %v221_v11  ;;  %vm233_vm1 = vcmp.eq.s32.totalorder %v229_v17, 1  ;;  %vm670_vm15 = vcmp.eq.s32.totalorder %v1233_v1, 40 }
  0xbe   :  { %v236_v19 = vsel %vm233_vm1, %v1095_v13, %v220_v7  ;;  %v673_v51 = vsel %vm670_vm15, 1, %v1204_v0 }
  0xbf   :  { %v252_v22 = vsel %vm249_vm2, %v1096_v16, %v236_v19  ;;  %vm654_vm2 = vcmp.eq.s32.totalorder %v1233_v1, 39 }
  0xc0   :  { %v657_v54 = vsel %vm654_vm2, 1, %v1204_v0  ;;  %vm734_vm2 = vcmp.eq.s32.totalorder %v1233_v1, 44 }
  0xc1   :  { %599 = vperm.xlu2 %1082, %v594_v20   ;;  %596 = vperm.xlu1 %1081, %v593_v21  }
  0xc2   :  { %583 = vperm.xlu0 %1080, %v578_v23   ;;  %v737_v23 = vsel %vm734_vm2, 1, %v1204_v0 }
  0xc3   :  { %v1411_v25 = vpop.permute.xlu2 %340  ;;  %v261_v26 = vpop.permute.xlu1 %260 }
  0xc4   :  { %vm265_vm5 = vcmp.eq.s32.totalorder %v261_v26, 1  ;;  %v248_v27 = vpop.permute.xlu0 %247  ;;  %vm345_vm10 = vcmp.eq.s32.totalorder %v1411_v25, 1  ;;  %v1106_v26 = vld [vmem:[#allocation2 + $0x17] ss:$0 sm:$0xff] }
  0xc5   :  { %v268_v28 = vsel %vm265_vm5, %v1097_v24, %v252_v22  ;;  %vm250_vm7 = vcmp.eq.s32.totalorder %v248_v27, 1  ;;  %vm687_vm5 = vcmp.eq.s32.totalorder %v1241_v2, 41 }
  0xc6   :  { %v253_v29 = vsel %vm250_vm7, %v1096_v16, %v237_v18  ;;  %v690_v62 = vsel %vm687_vm5, 1, %v1204_v0  ;;  %v1105_v18 = vld [vmem:[#allocation2 + $0x16] ss:$0 sm:$0xff] }
  0xc7   :  { %v269_v32 = vsel %vm266_vm8, %v1097_v24, %v253_v29  ;;  %vm671_vm8 = vcmp.eq.s32.totalorder %v1241_v2, 40 }
  0xc8   :  { %v674_v4 = vsel %vm671_vm8, 1, %v1204_v0  ;;  %vm751_vm8 = vcmp.eq.s32.totalorder %v1241_v2, 45 }
  0xc9   :  { %628 = vperm.xlu2 %1082, %v625_v30   ;;  %615 = vperm.xlu1 %1081, %v610_v31  }
  0xca   :  { %612 = vperm.xlu0 %1080, %v609_v33   ;;  %v754_v33 = vsel %vm751_vm8, 1, %v1204_v0 }
  0xcb   :  { %v1420_v35 = vpop.permute.xlu2 %359  ;;  %v280_v36 = vpop.permute.xlu1 %279 }
  0xcc   :  { %vm282_vm11 = vcmp.eq.s32.totalorder %v280_v36, 1  ;;  %v277_v38 = vpop.permute.xlu0 %276  ;;  %vm362_vm0 = vcmp.eq.s32.totalorder %v1420_v35, 1  ;;  %v1107_v36 = vld [vmem:[#allocation2 + $0x18] ss:$0 sm:$0xff] }
  0xcd   :  { %v285_v39 = vsel %vm282_vm11, %v1098_v34, %v269_v32  ;;  %vm281_vm13 = vcmp.eq.s32.totalorder %v277_v38, 1  ;;  %vm718_vm11 = vcmp.eq.s32.totalorder %v1233_v1, 43  ;;  %v1485_v38 = vld [vmem:[%s1599_s0] sm:$0xff] }
  0xce   :  { %v284_v40 = vsel %vm281_vm13, %v1098_v34, %v268_v28  ;;  %v721_v11 = vsel %vm718_vm11, 1, %v1204_v0 }
  0xcf   :  { %v300_v43 = vsel %vm297_vm14, %v1099_v37, %v284_v40  ;;  %vm702_vm14 = vcmp.eq.s32.totalorder %v1233_v1, 42 }
  0xd0   :  { %v705_v14 = vsel %vm702_vm14, 1, %v1204_v0  ;;  %vm782_vm14 = vcmp.eq.s32.totalorder %v1485_v38, 47 }
  0xd1   :  { %647 = vperm.xlu2 %1082, %v642_v41   ;;  %644 = vperm.xlu1 %1081, %v641_v42  }
  0xd2   :  { %631 = vperm.xlu0 %1080, %v626_v44   ;;  %v785_v44 = vsel %vm782_vm14, 1, %v1204_v0 }
  0xd3   :  { %v1429_v46 = vpop.permute.xlu2 %388  ;;  %v309_v47 = vpop.permute.xlu1 %308 }
  0xd4   :  { %vm313_vm1 = vcmp.eq.s32.totalorder %v309_v47, 1  ;;  %v296_v48 = vpop.permute.xlu0 %295  ;;  %vm393_vm6 = vcmp.eq.s32.totalorder %v1429_v46, 1  ;;  %v1109_v47 = vld [vmem:[#allocation2 + $0x1a] ss:$0 sm:$0xff] }
  0xd5   :  { %v316_v49 = vsel %vm313_vm1, %v1100_v45, %v300_v43  ;;  %vm298_vm3 = vcmp.eq.s32.totalorder %v296_v48, 1  ;;  %vm735_vm1 = vcmp.eq.s32.totalorder %v1241_v2, 44 }
  0xd6   :  { %v301_v50 = vsel %vm298_vm3, %v1099_v37, %v285_v39  ;;  %v738_v22 = vsel %vm735_vm1, 1, %v1204_v0  ;;  %v1108_v39 = vld [vmem:[#allocation2 + $0x19] ss:$0 sm:$0xff] }
  0xd7   :  { %v317_v53 = vsel %vm314_vm4, %v1100_v45, %v301_v50  ;;  %vm719_vm4 = vcmp.eq.s32.totalorder %v1241_v2, 43 }
  0xd8   :  { %v722_v24 = vsel %vm719_vm4, 1, %v1204_v0 }
  0xd9   :  { %676 = vperm.xlu2 %1082, %v673_v51   ;;  %663 = vperm.xlu1 %1081, %v658_v52  }
  0xda   :  { %660 = vperm.xlu0 %1080, %v657_v54  }
  0xdb   :  { %v1438_v56 = vpop.permute.xlu2 %407  ;;  %v328_v57 = vpop.permute.xlu1 %327 }
  0xdc   :  { %vm330_vm7 = vcmp.eq.s32.totalorder %v328_v57, 1  ;;  %v325_v59 = vpop.permute.xlu0 %324  ;;  %vm410_vm12 = vcmp.eq.s32.totalorder %v1438_v56, 1  ;;  %v1110_v57 = vld [vmem:[#allocation2 + $0x1b] ss:$0 sm:$0xff] }
  0xdd   :  { %v333_v60 = vsel %vm330_vm7, %v1101_v55, %v317_v53  ;;  %vm329_vm9 = vcmp.eq.s32.totalorder %v325_v59, 1  ;;  %vm766_vm7 = vcmp.eq.s32.totalorder %v1233_v1, 46 }
  0xde   :  { %v332_v61 = vsel %vm329_vm9, %v1101_v55, %v316_v49  ;;  %v769_v32 = vsel %vm766_vm7, 1, %v1204_v0 }
  0xdf   :  { %v348_v3 = vsel %vm345_vm10, %v1102_v58, %v332_v61  ;;  %vm750_vm10 = vcmp.eq.s32.totalorder %v1233_v1, 45  ;;  %v1479_v1 = vld [vmem:[%s1599_s0 + $0x8] sm:$0xff]  ;;  %s1205_s0 = smov [#allocation5]  }
  0xe0   :  { %v753_v34 = vsel %vm750_vm10, 1, %v1204_v0  ;;  %vm799_vm4 = vcmp.eq.s32.totalorder %v1479_v1, 48  ;;  %vm830_vm10 = vcmp.eq.s32.totalorder %v1485_v38, 50  ;;  %s1060_s23 = sshll.u32 %s1205_s0, 4  ;;  %s1061_s23 = int_to_ptr.vmem [resolvable:$true] %s1060_s23 }
  0xe1   :  { %695 = vperm.xlu2 %1082, %v690_v62   ;;  %692 = vperm.xlu1 %1081, %v689_v63   ;;  %v802_v54 = vsel %vm799_vm4, 1, %v1204_v0 }
  0xe2   :  { %679 = vperm.xlu0 %1080, %v674_v4   ;;  %v833_v4 = vsel %vm830_vm10, 1, %v1204_v0 }
  0xe3   :  { %v1447_v6 = vpop.permute.xlu2 %436  ;;  %v357_v7 = vpop.permute.xlu1 %356 }
  0xe4   :  { %vm361_vm13 = vcmp.eq.s32.totalorder %v357_v7, 1  ;;  %v344_v8 = vpop.permute.xlu0 %343  ;;  %vm441_vm2 = vcmp.eq.s32.totalorder %v1447_v6, 1  ;;  %v1112_v7 = vld [vmem:[#allocation2 + $0x1d] ss:$0 sm:$0xff] }
  0xe5   :  { %v364_v9 = vsel %vm361_vm13, %v1103_v5, %v348_v3  ;;  %vm346_vm15 = vcmp.eq.s32.totalorder %v344_v8, 1  ;;  %vm783_vm13 = vcmp.eq.s32.totalorder %v1479_v1, 47 }
  0xe6   :  { %v349_v10 = vsel %vm346_vm15, %v1102_v58, %v333_v60  ;;  %v786_v43 = vsel %vm783_vm13, 1, %v1204_v0  ;;  %v1111_v60 = vld [vmem:[#allocation2 + $0x1c] ss:$0 sm:$0xff] }
  0xe7   :  { %v365_v13 = vsel %vm362_vm0, %v1103_v5, %v349_v10  ;;  %vm767_vm0 = vcmp.eq.s32.totalorder %v1479_v1, 46 }
  0xe8   :  { %v770_v45 = vsel %vm767_vm0, 1, %v1204_v0  ;;  %vm847_vm0 = vcmp.eq.s32.totalorder %v1479_v1, 51 }
  0xe9   :  { %724 = vperm.xlu2 %1082, %v721_v11   ;;  %711 = vperm.xlu1 %1081, %v706_v12  }
  0xea   :  { %708 = vperm.xlu0 %1080, %v705_v14   ;;  %v850_v14 = vsel %vm847_vm0, 1, %v1204_v0 }
  0xeb   :  { %v1456_v16 = vpop.permute.xlu2 %455  ;;  %v376_v17 = vpop.permute.xlu1 %375 }
  0xec   :  { %vm378_vm3 = vcmp.eq.s32.totalorder %v376_v17, 1  ;;  %v373_v19 = vpop.permute.xlu0 %372  ;;  %vm458_vm8 = vcmp.eq.s32.totalorder %v1456_v16, 1  ;;  %v1113_v17 = vld [vmem:[#allocation2 + $0x1e] ss:$0 sm:$0xff] }
  0xed   :  { %v381_v20 = vsel %vm378_vm3, %v1104_v15, %v365_v13  ;;  %vm377_vm5 = vcmp.eq.s32.totalorder %v373_v19, 1  ;;  %vm814_vm3 = vcmp.eq.s32.totalorder %v1485_v38, 49 }
  0xee   :  { %v380_v21 = vsel %vm377_vm5, %v1104_v15, %v364_v9  ;;  %v817_v53 = vsel %vm814_vm3, 1, %v1204_v0 }
  0xef   :  { %v396_v25 = vsel %vm393_vm6, %v1105_v18, %v380_v21  ;;  %vm798_vm6 = vcmp.eq.s32.totalorder %v1485_v38, 48 }
  0xf0   :  { %v801_v55 = vsel %vm798_vm6, 1, %v1204_v0  ;;  %vm878_vm6 = vcmp.eq.s32.totalorder %v1485_v38, 53 }
  0xf1   :  { %743 = vperm.xlu2 %1082, %v738_v22   ;;  %740 = vperm.xlu1 %1081, %v737_v23  }
  0xf2   :  { %727 = vperm.xlu0 %1080, %v722_v24  }
  0xf3   :  { %v1465_v27 = vpop.permute.xlu2 %484  ;;  %v405_v28 = vpop.permute.xlu1 %404 }
  0xf4   :  { %vm409_vm9 = vcmp.eq.s32.totalorder %v405_v28, 1  ;;  %v392_v29 = vpop.permute.xlu0 %391  ;;  %vm489_vm14 = vcmp.eq.s32.totalorder %v1465_v27, 1  ;;  %v1115_v28 = vld [vmem:[#allocation2 + $0x20] ss:$0 sm:$0xff] }
  0xf5   :  { %v412_v30 = vsel %vm409_vm9, %v1106_v26, %v396_v25  ;;  %vm394_vm11 = vcmp.eq.s32.totalorder %v392_v29, 1  ;;  %vm831_vm9 = vcmp.eq.s32.totalorder %v1479_v1, 50  ;;  %v881_v25 = vsel %vm878_vm6, 1, %v1204_v0 }
  0xf6   :  { %v397_v31 = vsel %vm394_vm11, %v1105_v18, %v381_v20  ;;  %v834_v3 = vsel %vm831_vm9, 1, %v1204_v0  ;;  %v1114_v20 = vld [vmem:[#allocation2 + $0x1f] ss:$0 sm:$0xff] }
  0xf7   :  { %v413_v35 = vsel %vm410_vm12, %v1106_v26, %v397_v31  ;;  %vm815_vm12 = vcmp.eq.s32.totalorder %v1479_v1, 49 }
  0xf8   :  { %v818_v5 = vsel %vm815_vm12, 1, %v1204_v0  ;;  %vm895_vm12 = vcmp.eq.s32.totalorder %v1479_v1, 54 }
  0xf9   :  { %772 = vperm.xlu2 %1082, %v769_v32   ;;  %759 = vperm.xlu1 %1081, %v754_v33  }
  0xfa   :  { %756 = vperm.xlu0 %1080, %v753_v34  }
  0xfb   :  { %v1474_v2 = vpop.permute.xlu2 %503  ;;  %v424_v37 = vpop.permute.xlu1 %423 }
  0xfc   :  { %vm426_vm15 = vcmp.eq.s32.totalorder %v424_v37, 1  ;;  %v421_v40 = vpop.permute.xlu0 %420  ;;  %vm506_vm4 = vcmp.eq.s32.totalorder %v1474_v2, 1  ;;  %v1116_v37 = vld [vmem:[#allocation2 + $0x21] ss:$0 sm:$0xff] }
  0xfd   :  { %v429_v41 = vsel %vm426_vm15, %v1107_v36, %v413_v35  ;;  %vm425_vm1 = vcmp.eq.s32.totalorder %v421_v40, 1  ;;  %vm862_vm15 = vcmp.eq.s32.totalorder %v1485_v38, 52  ;;  %v898_v35 = vsel %vm895_vm12, 1, %v1204_v0 }
  0xfe   :  { %v428_v42 = vsel %vm425_vm1, %v1107_v36, %v412_v30  ;;  %v865_v13 = vsel %vm862_vm15, 1, %v1204_v0 }
  0xff   :  { %v444_v46 = vsel %vm441_vm2, %v1108_v39, %v428_v42  ;;  %vm846_vm2 = vcmp.eq.s32.totalorder %v1485_v38, 51 }
 0x100   :  { %v849_v15 = vsel %vm846_vm2, 1, %v1204_v0  ;;  %vm926_vm2 = vcmp.eq.s32.totalorder %v1485_v38, 56 }
 0x101   :  { %791 = vperm.xlu2 %1082, %v786_v43   ;;  %788 = vperm.xlu1 %1081, %v785_v44  }
 0x102   :  { %775 = vperm.xlu0 %1080, %v770_v45  }
 0x103   :  { %v1493_v48 = vpop.permute.xlu2 %532  ;;  %v453_v49 = vpop.permute.xlu1 %452 }
 0x104   :  { %vm457_vm5 = vcmp.eq.s32.totalorder %v453_v49, 1  ;;  %v440_v50 = vpop.permute.xlu0 %439  ;;  %vm537_vm10 = vcmp.eq.s32.totalorder %v1493_v48, 1  ;;  %v1118_v49 = vld [vmem:[#allocation2 + $0x23] ss:$0 sm:$0xff] }
 0x105   :  { %v460_v51 = vsel %vm457_vm5, %v1109_v47, %v444_v46  ;;  %vm442_vm7 = vcmp.eq.s32.totalorder %v440_v50, 1  ;;  %vm879_vm5 = vcmp.eq.s32.totalorder %v1479_v1, 53  ;;  %v929_v46 = vsel %vm926_vm2, 1, %v1204_v0 }
 0x106   :  { %v445_v52 = vsel %vm442_vm7, %v1108_v39, %v429_v41  ;;  %v882_v24 = vsel %vm879_vm5, 1, %v1204_v0  ;;  %v1117_v41 = vld [vmem:[#allocation2 + $0x22] ss:$0 sm:$0xff] }
 0x107   :  { %v461_v56 = vsel %vm458_vm8, %v1109_v47, %v445_v52  ;;  %vm863_vm8 = vcmp.eq.s32.totalorder %v1479_v1, 52 }
 0x108   :  { %v866_v26 = vsel %vm863_vm8, 1, %v1204_v0  ;;  %vm943_vm8 = vcmp.eq.s32.totalorder %v1479_v1, 57 }
 0x109   :  { %820 = vperm.xlu2 %1082, %v817_v53   ;;  %807 = vperm.xlu1 %1081, %v802_v54  }
 0x10a   :  { %804 = vperm.xlu0 %1080, %v801_v55  }
 0x10b   :  { %v1502_v58 = vpop.permute.xlu2 %551  ;;  %v472_v59 = vpop.permute.xlu1 %471 }
 0x10c   :  { %vm474_vm11 = vcmp.eq.s32.totalorder %v472_v59, 1  ;;  %v469_v61 = vpop.permute.xlu0 %468  ;;  %vm554_vm0 = vcmp.eq.s32.totalorder %v1502_v58, 1  ;;  %v1119_v59 = vld [vmem:[#allocation2 + $0x24] ss:$0 sm:$0xff] }
 0x10d   :  { %v477_v62 = vsel %vm474_vm11, %v1110_v57, %v461_v56  ;;  %vm473_vm13 = vcmp.eq.s32.totalorder %v469_v61, 1  ;;  %vm910_vm11 = vcmp.eq.s32.totalorder %v1485_v38, 55  ;;  %v946_v56 = vsel %vm943_vm8, 1, %v1204_v0  ;;  %v1120_v61 = vld [vmem:[#allocation2 + $0x25] ss:$0 sm:$0xff] }
 0x10e   :  { %v476_v63 = vsel %vm473_vm13, %v1110_v57, %v460_v51  ;;  %v913_v34 = vsel %vm910_vm11, 1, %v1204_v0 }
 0x10f   :  { %v492_v6 = vsel %vm489_vm14, %v1111_v60, %v476_v63  ;;  %vm894_vm14 = vcmp.eq.s32.totalorder %v1485_v38, 54 }
 0x110   :  { %v897_v36 = vsel %vm894_vm14, 1, %v1204_v0  ;;  %vm974_vm14 = vcmp.eq.s32.totalorder %v1485_v38, 59 }
 0x111   :  { %839 = vperm.xlu2 %1082, %v834_v3   ;;  %836 = vperm.xlu1 %1081, %v833_v4  }
 0x112   :  { %823 = vperm.xlu0 %1080, %v818_v5  }
 0x113   :  { %v1511_v8 = vpop.permute.xlu2 %580  ;;  %v501_v9 = vpop.permute.xlu1 %500 }
 0x114   :  { %vm505_vm1 = vcmp.eq.s32.totalorder %v501_v9, 1  ;;  %v488_v10 = vpop.permute.xlu0 %487  ;;  %vm585_vm6 = vcmp.eq.s32.totalorder %v1511_v8, 1  ;;  %v1121_v9 = vld [vmem:[#allocation2 + $0x26] ss:$0 sm:$0xff] }
 0x115   :  { %v508_v11 = vsel %vm505_vm1, %v1112_v7, %v492_v6  ;;  %vm490_vm3 = vcmp.eq.s32.totalorder %v488_v10, 1  ;;  %vm927_vm1 = vcmp.eq.s32.totalorder %v1479_v1, 56  ;;  %v977_v6 = vsel %vm974_vm14, 1, %v1204_v0 }
 0x116   :  { %v493_v12 = vsel %vm490_vm3, %v1111_v60, %v477_v62  ;;  %v930_v45 = vsel %vm927_vm1, 1, %v1204_v0 }
 0x117   :  { %v509_v16 = vsel %vm506_vm4, %v1112_v7, %v493_v12  ;;  %vm911_vm4 = vcmp.eq.s32.totalorder %v1479_v1, 55 }
 0x118   :  { %v914_v47 = vsel %vm911_vm4, 1, %v1204_v0  ;;  %vm991_vm4 = vcmp.eq.s32.totalorder %v1479_v1, 60 }
 0x119   :  { %868 = vperm.xlu2 %1082, %v865_v13   ;;  %855 = vperm.xlu1 %1081, %v850_v14  }
 0x11a   :  { %852 = vperm.xlu0 %1080, %v849_v15  }
 0x11b   :  { %v1520_v18 = vpop.permute.xlu2 %599  ;;  %v520_v19 = vpop.permute.xlu1 %519 }
 0x11c   :  { %vm522_vm7 = vcmp.eq.s32.totalorder %v520_v19, 1  ;;  %v517_v21 = vpop.permute.xlu0 %516  ;;  %vm602_vm12 = vcmp.eq.s32.totalorder %v1520_v18, 1  ;;  %v1122_v19 = vld [vmem:[#allocation2 + $0x27] ss:$0 sm:$0xff] }
 0x11d   :  { %v525_v22 = vsel %vm522_vm7, %v1113_v17, %v509_v16  ;;  %vm521_vm9 = vcmp.eq.s32.totalorder %v517_v21, 1  ;;  %vm958_vm7 = vcmp.eq.s32.totalorder %v1485_v38, 58  ;;  %v994_v16 = vsel %vm991_vm4, 1, %v1204_v0  ;;  %v1123_v21 = vld [vmem:[#allocation2 + $0x28] ss:$0 sm:$0xff] }
 0x11e   :  { %v524_v23 = vsel %vm521_vm9, %v1113_v17, %v508_v11  ;;  %v961_v55 = vsel %vm958_vm7, 1, %v1204_v0 }
 0x11f   :  { %v540_v27 = vsel %vm537_vm10, %v1114_v20, %v524_v23  ;;  %vm942_vm10 = vcmp.eq.s32.totalorder %v1485_v38, 57 }
 0x120   :  { %v945_v57 = vsel %vm942_vm10, 1, %v1204_v0  ;;  %vm1022_vm10 = vcmp.eq.s32.totalorder %v1485_v38, 62 }
 0x121   :  { %887 = vperm.xlu2 %1082, %v882_v24   ;;  %884 = vperm.xlu1 %1081, %v881_v25  }
 0x122   :  { %871 = vperm.xlu0 %1080, %v866_v26   ;;  %v1025_v26 = vsel %vm1022_vm10, 1, %v1204_v0 }
 0x123   :  { %v1529_v29 = vpop.permute.xlu2 %628  ;;  %v549_v30 = vpop.permute.xlu1 %548 }
 0x124   :  { %vm553_vm13 = vcmp.eq.s32.totalorder %v549_v30, 1  ;;  %v536_v31 = vpop.permute.xlu0 %535  ;;  %vm633_vm2 = vcmp.eq.s32.totalorder %v1529_v29, 1  ;;  %v1124_v30 = vld [vmem:[#allocation2 + $0x29] ss:$0 sm:$0xff] }
 0x125   :  { %v556_v32 = vsel %vm553_vm13, %v1115_v28, %v540_v27  ;;  %vm538_vm15 = vcmp.eq.s32.totalorder %v536_v31, 1  ;;  %vm975_vm13 = vcmp.eq.s32.totalorder %v1479_v1, 59 }
 0x126   :  { %v541_v33 = vsel %vm538_vm15, %v1114_v20, %v525_v22  ;;  %v978_v5 = vsel %vm975_vm13, 1, %v1204_v0 }
 0x127   :  { %v557_v2 = vsel %vm554_vm0, %v1115_v28, %v541_v33  ;;  %vm959_vm0 = vcmp.eq.s32.totalorder %v1479_v1, 58 }
 0x128   :  { %v962_v7 = vsel %vm959_vm0, 1, %v1204_v0 }
 0x129   :  { %916 = vperm.xlu2 %1082, %v913_v34   ;;  %903 = vperm.xlu1 %1081, %v898_v35  }
 0x12a   :  { %900 = vperm.xlu0 %1080, %v897_v36  }
 0x12b   :  { %v1538_v39 = vpop.permute.xlu2 %647  ;;  %v568_v40 = vpop.permute.xlu1 %567 }
 0x12c   :  { %vm570_vm3 = vcmp.eq.s32.totalorder %v568_v40, 1  ;;  %v565_v42 = vpop.permute.xlu0 %564  ;;  %vm650_vm8 = vcmp.eq.s32.totalorder %v1538_v39, 1 }
 0x12d   :  { %v573_v43 = vsel %vm570_vm3, %v1116_v37, %v557_v2  ;;  %vm569_vm5 = vcmp.eq.s32.totalorder %v565_v42, 1  ;;  %vm1006_vm3 = vcmp.eq.s32.totalorder %v1485_v38, 61 }
 0x12e   :  { %v572_v44 = vsel %vm569_vm5, %v1116_v37, %v556_v32  ;;  %v1009_v15 = vsel %vm1006_vm3, 1, %v1204_v0  ;;  %v1125_v37 = vld [vmem:[#allocation2 + $0x2a] ss:$0 sm:$0xff] }
 0x12f   :  { %v588_v48 = vsel %vm585_vm6, %v1117_v41, %v572_v44  ;;  %vm990_vm6 = vcmp.eq.s32.totalorder %v1485_v38, 60  ;;  %v1127_v44 = vld [vmem:[#allocation2 + $0x2c] ss:$0 sm:$0xff] }
 0x130   :  { %v993_v17 = vsel %vm990_vm6, 1, %v1204_v0 }
 0x131   :  { %935 = vperm.xlu2 %1082, %v930_v45   ;;  %932 = vperm.xlu1 %1081, %v929_v46  }
 0x132   :  { %919 = vperm.xlu0 %1080, %v914_v47  }
 0x133   :  { %v1547_v50 = vpop.permute.xlu2 %676  ;;  %v597_v51 = vpop.permute.xlu1 %596 }
 0x134   :  { %vm601_vm9 = vcmp.eq.s32.totalorder %v597_v51, 1  ;;  %v584_v52 = vpop.permute.xlu0 %583  ;;  %vm681_vm14 = vcmp.eq.s32.totalorder %v1547_v50, 1  ;;  %v1128_v50 = vld [vmem:[#allocation2 + $0x2d] ss:$0 sm:$0xff] }
 0x135   :  { %v604_v53 = vsel %vm601_vm9, %v1118_v49, %v588_v48  ;;  %vm586_vm11 = vcmp.eq.s32.totalorder %v584_v52, 1  ;;  %vm1023_vm9 = vcmp.eq.s32.totalorder %v1479_v1, 62  ;;  %v1129_v52 = vld [vmem:[#allocation2 + $0x2e] ss:$0 sm:$0xff] }
 0x136   :  { %v589_v54 = vsel %vm586_vm11, %v1117_v41, %v573_v43  ;;  %v1026_v25 = vsel %vm1023_vm9, 1, %v1204_v0 }
 0x137   :  { %v605_v58 = vsel %vm602_vm12, %v1118_v49, %v589_v54  ;;  %vm1007_vm12 = vcmp.eq.s32.totalorder %v1479_v1, 61 }
 0x138   :  { %v1010_v27 = vsel %vm1007_vm12, 1, %v1204_v0 }
 0x139   :  { %964 = vperm.xlu2 %1082, %v961_v55   ;;  %951 = vperm.xlu1 %1081, %v946_v56  }
 0x13a   :  { %948 = vperm.xlu0 %1080, %v945_v57  }
 0x13b   :  { %v616_v60 = vpop.permute.xlu1 %615  ;;  %v1558_v62 = vpop.permute.xlu2 %695 }
 0x13c   :  { %vm618_vm15 = vcmp.eq.s32.totalorder %v616_v60, 1  ;;  %v613_v63 = vpop.permute.xlu0 %612  ;;  %vm698_vm3 = vcmp.eq.s32.totalorder %v1558_v62, 1 }
 0x13d   :  { %v621_v3 = vsel %vm618_vm15, %v1119_v59, %v605_v58  ;;  %vm617_vm1 = vcmp.eq.s32.totalorder %v613_v63, 1  ;;  %vm1039_vm15 = vcmp.eq.s32.totalorder %v1479_v1, 63  ;;  %v1126_v1 = vld [vmem:[#allocation2 + $0x2b] ss:$0 sm:$0xff]  ;;  %v1130_v58 = vld [vmem:[#allocation2 + $0x2f] ss:$0 sm:$0xff] }
 0x13e   :  { %v620_v4 = vsel %vm617_vm1, %v1119_v59, %v604_v53  ;;  %vm1038_vm1 = vcmp.eq.s32.totalorder %v1485_v38, 63  ;;  %v1042_v35 = vsel %vm1039_vm15, 1, %v1204_v0 }
 0x13f   :  { %v636_v8 = vsel %vm633_vm2, %v1120_v61, %v620_v4  ;;  %v1041_v36 = vsel %vm1038_vm1, 1, %v1204_v0  ;;  %v1131_v4 = vld [vmem:[#allocation2 + $0x30] ss:$0 sm:$0xff] }
 0x141   :  { %983 = vperm.xlu2 %1082, %v978_v5   ;;  %980 = vperm.xlu1 %1081, %v977_v6  }
 0x142   :  { %967 = vperm.xlu0 %1080, %v962_v7  }
 0x143   :  { %v645_v10 = vpop.permute.xlu1 %644  ;;  %v725_v13 = vpop.permute.xlu2 %724 }
 0x144   :  { %vm649_vm5 = vcmp.eq.s32.totalorder %v645_v10, 1  ;;  %v632_v11 = vpop.permute.xlu0 %631  ;;  %vm729_vm6 = vcmp.eq.s32.totalorder %v725_v13, 1 }
 0x145   :  { %v652_v12 = vsel %vm649_vm5, %v1121_v9, %v636_v8  ;;  %vm634_vm7 = vcmp.eq.s32.totalorder %v632_v11, 1 }
 0x146   :  { %v637_v14 = vsel %vm634_vm7, %v1120_v61, %v621_v3 }
 0x147   :  { %v653_v18 = vsel %vm650_vm8, %v1121_v9, %v637_v14 }
 0x149   :  { %1012 = vperm.xlu2 %1082, %v1009_v15   ;;  %999 = vperm.xlu1 %1081, %v994_v16  }
 0x14a   :  { %996 = vperm.xlu0 %1080, %v993_v17  }
 0x14b   :  { %v664_v20 = vpop.permute.xlu1 %663  ;;  %v744_v29 = vpop.permute.xlu2 %743 }
 0x14c   :  { %vm666_vm11 = vcmp.eq.s32.totalorder %v664_v20, 1  ;;  %v661_v22 = vpop.permute.xlu0 %660  ;;  %vm746_vm9 = vcmp.eq.s32.totalorder %v744_v29, 1 }
 0x14d   :  { %v669_v23 = vsel %vm666_vm11, %v1122_v19, %v653_v18  ;;  %vm665_vm13 = vcmp.eq.s32.totalorder %v661_v22, 1 }
 0x14e   :  { %v668_v24 = vsel %vm665_vm13, %v1122_v19, %v652_v12 }
 0x14f   :  { %v684_v28 = vsel %vm681_vm14, %v1123_v21, %v668_v24 }
 0x151   :  { %1031 = vperm.xlu2 %1082, %v1026_v25   ;;  %1028 = vperm.xlu1 %1081, %v1025_v26   ;;  %v1132_v26 = vld [vmem:[#allocation2 + $0x31] ss:$0 sm:$0xff] }
 0x152   :  { %1015 = vperm.xlu0 %1080, %v1010_v27  }
 0x153   :  { %v693_v31 = vpop.permute.xlu1 %692  ;;  %v773_v39 = vpop.permute.xlu2 %772 }
 0x154   :  { %vm697_vm0 = vcmp.eq.s32.totalorder %v693_v31, 1  ;;  %v680_v32 = vpop.permute.xlu0 %679  ;;  %vm777_vm12 = vcmp.eq.s32.totalorder %v773_v39, 1 }
 0x155   :  { %v700_v33 = vsel %vm697_vm0, %v1124_v30, %v684_v28  ;;  %vm682_vm2 = vcmp.eq.s32.totalorder %v680_v32, 1  ;;  %v1133_v28 = vld [vmem:[#allocation2 + $0x32] ss:$0 sm:$0xff]  ;;  %v1134_v32 = vld [vmem:[#allocation2 + $0x33] ss:$0 sm:$0xff] }
 0x156   :  { %v685_v34 = vsel %vm682_vm2, %v1123_v21, %v669_v23 }
 0x157   :  { %v701_v2 = vsel %vm698_vm3, %v1124_v30, %v685_v34 }
 0x159   :  { %1047 = vperm.xlu1 %1081, %v1042_v35   ;;  %v1135_v35 = vld [vmem:[#allocation2 + $0x34] ss:$0 sm:$0xff] }
 0x15a   :  { %1044 = vperm.xlu0 %1080, %v1041_v36  }
 0x15b   :  { %v712_v40 = vpop.permute.xlu1 %711  ;;  %v792_v46 = vpop.permute.xlu2 %791 }
 0x15c   :  { %vm714_vm4 = vcmp.eq.s32.totalorder %v712_v40, 1  ;;  %v709_v41 = vpop.permute.xlu0 %708  ;;  %vm794_vm15 = vcmp.eq.s32.totalorder %v792_v46, 1 }
 0x15d   :  { %v717_v42 = vsel %vm714_vm4, %v1125_v37, %v701_v2  ;;  %vm713_vm5 = vcmp.eq.s32.totalorder %v709_v41, 1 }
 0x15e   :  { %v716_v38 = vsel %vm713_vm5, %v1125_v37, %v700_v33  ;;  %v1136_v37 = vld [vmem:[#allocation2 + $0x35] ss:$0 sm:$0xff] }
 0x15f   :  { %v732_v43 = vsel %vm729_vm6, %v1126_v1, %v716_v38 }
 0x163   :  { %v741_v45 = vpop.permute.xlu1 %740  ;;  %v821_v55 = vpop.permute.xlu2 %820 }
 0x164   :  { %vm745_vm7 = vcmp.eq.s32.totalorder %v741_v45, 1  ;;  %v728_v47 = vpop.permute.xlu0 %727  ;;  %vm825_vm5 = vcmp.eq.s32.totalorder %v821_v55, 1 }
 0x165   :  { %v748_v0 = vsel %vm745_vm7, %v1127_v44, %v732_v43  ;;  %vm730_vm8 = vcmp.eq.s32.totalorder %v728_v47, 1 }
 0x166   :  { %v733_v48 = vsel %vm730_vm8, %v1126_v1, %v717_v42  ;;  %v1137_v1 = vld [vmem:[#allocation2 + $0x36] ss:$0 sm:$0xff] }
 0x167   :  { %v749_v49 = vsel %vm746_vm9, %v1127_v44, %v733_v48  ;;  %v1138_v44 = vld [vmem:[#allocation2 + $0x37] ss:$0 sm:$0xff] }
 0x16b   :  { %v760_v51 = vpop.permute.xlu1 %759  ;;  %v840_v3 = vpop.permute.xlu2 %839 }
 0x16c   :  { %vm762_vm10 = vcmp.eq.s32.totalorder %v760_v51, 1  ;;  %v757_v53 = vpop.permute.xlu0 %756  ;;  %vm842_vm6 = vcmp.eq.s32.totalorder %v840_v3, 1  ;;  %v1144_v3 = vld [vmem:[#allocation2 + $0x3d] ss:$0 sm:$0xff] }
 0x16d   :  { %v765_v54 = vsel %vm762_vm10, %v1128_v50, %v749_v49  ;;  %vm761_vm11 = vcmp.eq.s32.totalorder %v757_v53, 1  ;;  %v1141_v53 = vld [vmem:[#allocation2 + $0x3a] ss:$0 sm:$0xff] }
 0x16e   :  { %v764_v56 = vsel %vm761_vm11, %v1128_v50, %v748_v0  ;;  %v1139_v0 = vld [vmem:[#allocation2 + $0x38] ss:$0 sm:$0xff]  ;;  %v1140_v50 = vld [vmem:[#allocation2 + $0x39] ss:$0 sm:$0xff] }
 0x16f   :  { %v780_v57 = vsel %vm777_vm12, %v1129_v52, %v764_v56  ;;  %v1142_v56 = vld [vmem:[#allocation2 + $0x3b] ss:$0 sm:$0xff] }
 0x173   :  { %v789_v59 = vpop.permute.xlu1 %788  ;;  %v869_v9 = vpop.permute.xlu2 %868 }
 0x174   :  { %vm793_vm13 = vcmp.eq.s32.totalorder %v789_v59, 1  ;;  %v776_v60 = vpop.permute.xlu0 %775  ;;  %vm873_vm11 = vcmp.eq.s32.totalorder %v869_v9, 1 }
 0x175   :  { %v796_v61 = vsel %vm793_vm13, %v1130_v58, %v780_v57  ;;  %vm778_vm14 = vcmp.eq.s32.totalorder %v776_v60, 1  ;;  %v1143_v60 = vld [vmem:[#allocation2 + $0x3c] ss:$0 sm:$0xff] }
 0x176   :  { %v781_v62 = vsel %vm778_vm14, %v1129_v52, %v765_v54 }
 0x177   :  { %v797_v63 = vsel %vm794_vm15, %v1130_v58, %v781_v62 }
 0x17b   :  { %v808_v5 = vpop.permute.xlu1 %807  ;;  %v888_v13 = vpop.permute.xlu2 %887 }
 0x17c   :  { %vm810_vm0 = vcmp.eq.s32.totalorder %v808_v5, 1  ;;  %v805_v6 = vpop.permute.xlu0 %804  ;;  %vm890_vm12 = vcmp.eq.s32.totalorder %v888_v13, 1 }
 0x17d   :  { %v813_v7 = vsel %vm810_vm0, %v1131_v4, %v797_v63  ;;  %vm809_vm1 = vcmp.eq.s32.totalorder %v805_v6, 1 }
 0x17e   :  { %v812_v8 = vsel %vm809_vm1, %v1131_v4, %v796_v61 }
 0x17f   :  { %v828_v33 = vsel %vm825_vm5, %v1132_v26, %v812_v8 }
 0x183   :  { %v837_v10 = vpop.permute.xlu1 %836  ;;  %v917_v17 = vpop.permute.xlu2 %916 }
 0x184   :  { %v824_v11 = vpop.permute.xlu0 %823  ;;  %vm841_vm3 = vcmp.eq.s32.totalorder %v837_v10, 1  ;;  %vm921_vm1 = vcmp.eq.s32.totalorder %v917_v17, 1  ;;  %v1146_v10 = vld [vmem:[#allocation2 + $0x3f] ss:$0 sm:$0xff] }
 0x185   :  { %vm826_vm2 = vcmp.eq.s32.totalorder %v824_v11, 1  ;;  %v844_v36 = vsel %vm841_vm3, %v1133_v28, %v828_v33 }
 0x186   :  { %v829_v31 = vsel %vm826_vm2, %v1132_v26, %v813_v7  ;;  %v1145_v7 = vld [vmem:[#allocation2 + $0x3e] ss:$0 sm:$0xff] }
 0x187   :  { %v845_v34 = vsel %vm842_vm6, %v1133_v28, %v829_v31 }
 0x18b   :  { %v856_v12 = vpop.permute.xlu1 %855  ;;  %v936_v20 = vpop.permute.xlu2 %935 }
 0x18c   :  { %v853_v14 = vpop.permute.xlu0 %852  ;;  %vm858_vm4 = vcmp.eq.s32.totalorder %v856_v12, 1  ;;  %vm938_vm2 = vcmp.eq.s32.totalorder %v936_v20, 1 }
 0x18d   :  { %vm857_vm7 = vcmp.eq.s32.totalorder %v853_v14, 1  ;;  %v861_v2 = vsel %vm858_vm4, %v1134_v32, %v845_v34 }
 0x18e   :  { %v860_v39 = vsel %vm857_vm7, %v1134_v32, %v844_v36 }
 0x18f   :  { %v876_v38 = vsel %vm873_vm11, %v1135_v35, %v860_v39 }
 0x193   :  { %v885_v15 = vpop.permute.xlu1 %884  ;;  %v1584_v23 = vpop.permute.xlu2 %964 }
 0x194   :  { %v872_v16 = vpop.permute.xlu0 %871  ;;  %vm889_vm9 = vcmp.eq.s32.totalorder %v885_v15, 1  ;;  %vm969_vm7 = vcmp.eq.s32.totalorder %v1584_v23, 1 }
 0x195   :  { %vm874_vm8 = vcmp.eq.s32.totalorder %v872_v16, 1  ;;  %v892_v45 = vsel %vm889_vm9, %v1136_v37, %v876_v38 }
 0x196   :  { %v877_v40 = vsel %vm874_vm8, %v1135_v35, %v861_v2 }
 0x197   :  { %v893_v43 = vsel %vm890_vm12, %v1136_v37, %v877_v40 }
 0x19b   :  { %v904_v18 = vpop.permute.xlu1 %903  ;;  %v1588_v29 = vpop.permute.xlu2 %983 }
 0x19c   :  { %v901_v19 = vpop.permute.xlu0 %900  ;;  %vm906_vm10 = vcmp.eq.s32.totalorder %v904_v18, 1  ;;  %vm986_vm8 = vcmp.eq.s32.totalorder %v1588_v29, 1 }
 0x19d   :  { %vm905_vm13 = vcmp.eq.s32.totalorder %v901_v19, 1  ;;  %v909_v46 = vsel %vm906_vm10, %v1137_v1, %v893_v43 }
 0x19e   :  { %v908_v48 = vsel %vm905_vm13, %v1137_v1, %v892_v45 }
 0x19f   :  { %v924_v51 = vsel %vm921_vm1, %v1138_v44, %v908_v48 }
 0x1a3   :  { %v933_v21 = vpop.permute.xlu1 %932  ;;  %v1013_v47 = vpop.permute.xlu2 %1012 }
 0x1a4   :  { %v920_v22 = vpop.permute.xlu0 %919  ;;  %vm937_vm15 = vcmp.eq.s32.totalorder %v933_v21, 1  ;;  %vm1017_vm12 = vcmp.eq.s32.totalorder %v1013_v47, 1 }
 0x1a5   :  { %vm922_vm14 = vcmp.eq.s32.totalorder %v920_v22, 1  ;;  %v940_v54 = vsel %vm937_vm15, %v1139_v0, %v924_v51 }
 0x1a6   :  { %v925_v49 = vsel %vm922_vm14, %v1138_v44, %v909_v46 }
 0x1a7   :  { %v941_v52 = vsel %vm938_vm2, %v1139_v0, %v925_v49 }
 0x1ab   :  { %v952_v24 = vpop.permute.xlu1 %951  ;;  %v1032_v4 = vpop.permute.xlu2 %1031 }
 0x1ac   :  { %v949_v25 = vpop.permute.xlu0 %948  ;;  %vm954_vm0 = vcmp.eq.s32.totalorder %v952_v24, 1  ;;  %vm1034_vm13 = vcmp.eq.s32.totalorder %v1032_v4, 1 }
 0x1ad   :  { %vm953_vm3 = vcmp.eq.s32.totalorder %v949_v25, 1  ;;  %v957_v55 = vsel %vm954_vm0, %v1140_v50, %v941_v52 }
 0x1ae   :  { %v956_v58 = vsel %vm953_vm3, %v1140_v50, %v940_v54 }
 0x1af   :  { %v972_v62 = vsel %vm969_vm7, %v1141_v53, %v956_v58 }
 0x1b3   :  { %v1586_v27 = vpop.permute.xlu1 %980 }
 0x1b4   :  { %v968_v30 = vpop.permute.xlu0 %967  ;;  %vm985_vm5 = vcmp.eq.s32.totalorder %v1586_v27, 1 }
 0x1b5   :  { %vm970_vm4 = vcmp.eq.s32.totalorder %v968_v30, 1  ;;  %v988_v5 = vsel %vm985_vm5, %v1142_v56, %v972_v62 }
 0x1b6   :  { %v973_v59 = vsel %vm970_vm4, %v1141_v53, %v957_v55 }
 0x1b7   :  { %v989_v63 = vsel %vm986_vm8, %v1142_v56, %v973_v59 }
 0x1bb   :  { %v1000_v41 = vpop.permute.xlu1 %999 }
 0x1bc   :  { %v997_v42 = vpop.permute.xlu0 %996  ;;  %vm1002_vm6 = vcmp.eq.s32.totalorder %v1000_v41, 1 }
 0x1bd   :  { %vm1001_vm9 = vcmp.eq.s32.totalorder %v997_v42, 1  ;;  %v1005_v6 = vsel %vm1002_vm6, %v1143_v60, %v989_v63 }
 0x1be   :  { %v1004_v8 = vsel %vm1001_vm9, %v1143_v60, %v988_v5 }
 0x1bf   :  { %v1020_v12 = vsel %vm1017_vm12, %v1144_v3, %v1004_v8 }
 0x1c3   :  { %v1029_v57 = vpop.permute.xlu1 %1028 }
 0x1c4   :  { %v1016_v61 = vpop.permute.xlu0 %1015  ;;  %vm1033_vm11 = vcmp.eq.s32.totalorder %v1029_v57, 1 }
 0x1c5   :  { %vm1018_vm10 = vcmp.eq.s32.totalorder %v1016_v61, 1  ;;  %v1036_v15 = vsel %vm1033_vm11, %v1145_v7, %v1020_v12 }
 0x1c6   :  { %v1021_v9 = vsel %vm1018_vm10, %v1144_v3, %v1005_v6 }
 0x1c7   :  { %v1037_v13 = vsel %vm1034_vm13, %v1145_v7, %v1021_v9 }
 0x1cb   :  { %v1048_v11 = vpop.permute.xlu1 %1047 }
 0x1cc   :  { %vm1050_vm14 = vcmp.eq.s32.totalorder %v1048_v11, 1  ;;  %v1045_v14 = vpop.permute.xlu0 %1044 }
 0x1cd   :  { %v1053_v16 = vsel %vm1050_vm14, %v1146_v10, %v1037_v13  ;;  %vm1049_vm15 = vcmp.eq.s32.totalorder %v1045_v14, 1 }
 0x1ce   :  { %1055 = vst [vmem:[#allocation5 + $0x8] sm:$0xff] %v1053_v16  ;;  %v1052_v17 = vsel %vm1049_vm15, %v1146_v10, %v1036_v15 }
 0x1cf   :  { %1054 = vst [vmem:[#allocation5] sm:$0xff] %v1052_v17 }
 0x1d0   :  { %1068 = dma.vmem_to_hbm [thread:$0]  %s1061_s23, 256, %s1063_s26, [#allocation4], %s1202_s14, %s1202_s14, %s1203_s15  }
 0x1d1   :  { %1199 = dma.done.wait [#allocation4], 256  }
 0x1d2   :  { %1200 = vsyncadd [#allocation4], 4294967040 }
 0x1d3   :  { %1073 = vsyncpa [#allocation3], 1 }
 0x1d4   :  { %1074 = vsyncpa [#allocation4], 1 }

</bundles_post_ra>
